<compile_context>
chip_gen: v6e
topology: v6e:2x2x1
jax: 0.10.0
libtpu: 0.0.40
codegen_flags: <defaults>
</compile_context>

<pallas_src>
import jax
import jax.numpy as jnp
from jax.experimental import pallas as pl
from jax.experimental.pallas import tpu as pltpu


_VMEM_LIMIT_BYTES = 32 * 1024 * 1024   # safe on v5e (128 MiB), v6e (128), v7x (64)


# ----------------------------- Pallas kernels ------------------------------

def _conv_pool_relu_kernel(p_ref, w_ref, b_ref, o_ref):
    """Fused conv-as-matmul + bias + 2x2 maxpool + relu.

    p_ref: (4, K, Nt)  bf16  im2col patches; axis 0 = 2x2 pool-window slot
    w_ref: (Cout, K)   bf16  conv weight, (cin, kh, kw) minor order, zero-padded
    b_ref: (Cout, 1)   f32   conv bias (zero-padded rows)
    o_ref: (Cout, Nt)  bf16  pooled + relu'd activations (batch*spatial in lanes)
    """
    w = w_ref[...]
    # maxpool over the 4 window slots == max over 4 MXU results (bias commutes
    # with max since every slot shares the same per-channel bias).
    z = jnp.dot(w, p_ref[0], preferred_element_type=jnp.float32)
    for s in range(1, 4):
        z = jnp.maximum(z, jnp.dot(w, p_ref[s], preferred_element_type=jnp.float32))
    z = z + b_ref[...]                       # (Cout, 1) broadcast over lanes
    o_ref[...] = jnp.maximum(z, 0.0).astype(o_ref.dtype)


def _fc_softmax_kernel(h_ref, w1_ref, b1_ref, w2_ref, b2_ref, o_ref):
    """Fused fc1 + relu + fc2 + softmax(dim=1); hidden (TB, 64) stays on-chip.

    h_ref:  (TB, 320) bf16   flattened activations
    w1_ref: (320, 64) bf16   fc1 weight (transposed, N padded 50->64 with zeros)
    b1_ref: (1, 64)   f32    fc1 bias (padded with zeros)
    w2_ref: (64, 128) bf16   fc2 weight (transposed; K 50->64, N 10->128, zero pad)
    b2_ref: (1, 128)  f32    fc2 bias; pad columns hold -1e9 so softmax ignores them
    o_ref:  (TB, 128) f32    softmax probabilities (lane-dense; cols >= 10 are ~0)
    """
    h = h_ref[...]
    z1 = jnp.dot(h, w1_ref[...], preferred_element_type=jnp.float32) + b1_ref[...]
    a1 = jnp.maximum(z1, 0.0).astype(w2_ref.dtype)
    # TODO(synk): Dropout2d / F.dropout implemented as identity (eval-mode semantics).
    z2 = jnp.dot(a1, w2_ref[...], preferred_element_type=jnp.float32) + b2_ref[...]
    m = jnp.max(z2, axis=1, keepdims=True)
    e = jnp.exp(z2 - m)
    s = jnp.sum(e, axis=1, keepdims=True)
    o_ref[...] = (e / s).astype(o_ref.dtype)        # exact softmax (matches F.softmax)


# --------------------------- pallas_call wrappers ---------------------------

def _conv_pool_relu(patches, w, b, *, n_cols_tile, nb):
    cout, kdim = w.shape
    n_cols = patches.shape[2]
    return pl.pallas_call(
        _conv_pool_relu_kernel,
        out_shape=jax.ShapeDtypeStruct((cout, n_cols), jnp.bfloat16),
        grid_spec=pltpu.PrefetchScalarGridSpec(
            num_scalar_prefetch=0,
            grid=(nb,),
            in_specs=[pl.BlockSpec((4, kdim, n_cols_tile), lambda i: (0, 0, i)),
                      pl.BlockSpec((cout, kdim), lambda i: (0, 0)),
                      pl.BlockSpec((cout, 1), lambda i: (0, 0))],
            out_specs=pl.BlockSpec((cout, n_cols_tile), lambda i: (0, i))),
        compiler_params=pltpu.CompilerParams(
            dimension_semantics=("parallel",),
            vmem_limit_bytes=_VMEM_LIMIT_BYTES),
    )(patches, w, b)


def _fc_softmax(h, w1, b1, w2, b2, *, tb, nb):
    b_pad, din = h.shape
    dh = w1.shape[1]
    nout = w2.shape[1]
    return pl.pallas_call(
        _fc_softmax_kernel,
        out_shape=jax.ShapeDtypeStruct((b_pad, nout), jnp.float32),
        grid_spec=pltpu.PrefetchScalarGridSpec(
            num_scalar_prefetch=0,
            grid=(nb,),
            in_specs=[pl.BlockSpec((tb, din), lambda i: (i, 0)),
                      pl.BlockSpec((din, dh), lambda i: (0, 0)),
                      pl.BlockSpec((1, dh), lambda i: (0, 0)),
                      pl.BlockSpec((dh, nout), lambda i: (0, 0)),
                      pl.BlockSpec((1, nout), lambda i: (0, 0))],
            out_specs=pl.BlockSpec((tb, nout), lambda i: (i, 0))),
        compiler_params=pltpu.CompilerParams(
            dimension_semantics=("parallel",),
            vmem_limit_bytes=_VMEM_LIMIT_BYTES),
    )(h, w1, b1, w2, b2)


# ------------------------------- JAX glue ----------------------------------

def _pad_axis(a, axis, size):
    if size == a.shape[axis]:
        return a
    pad = [(0, 0)] * a.ndim
    pad[axis] = (0, size - a.shape[axis])
    return jnp.pad(a, pad)


def _pool_im2col(x, k):
    """x: (B, C, H, W) NCHW -> patches (4, C*k*k, B*PH*PW), plus pooled (PH, PW).

    Axis 0 enumerates the 2x2 max-pool window slot (wi*2+wj); rows use (ci, kh, kw)
    minor order (matches PyTorch conv weight reshape); columns are (b, pi, pj) so
    batch*pooled-spatial lives in the lane dimension of the conv output.
    """
    B, C, H, W = x.shape
    OH, OW = H - k + 1, W - k + 1
    PH, PW = OH // 2, OW // 2
    chunks = []
    for wi in range(2):
        for wj in range(2):
            cols = []
            for kh in range(k):
                for kw in range(k):
                    sh = x[:, :, kh:kh + OH, kw:kw + OW]        # (B, C, OH, OW)
                    cols.append(sh[:, :, wi::2, wj::2])          # (B, C, PH, PW)
            c = jnp.stack(cols, axis=2)                          # (B, C, k*k, PH, PW)
            c = c.reshape(B, C * k * k, PH * PW)                 # rows: (ci, kh, kw)
            c = jnp.transpose(c, (1, 0, 2)).reshape(C * k * k, B * PH * PW)
            chunks.append(c)
    return jnp.stack(chunks, axis=0), PH, PW                     # (4, CKK, B*PH*PW)


def _choose_batch_tile(batch, max_tile=64):
    """Pick a batch tile (multiple of 8 so all lane tiles are multiples of 128).

    Prefers tiles of 64 (amortizes per-step overhead) but splits mid-size batches
    into >= 2 grid steps so both v7x TensorCores get work under "parallel".
    """
    if batch <= 8:
        return 8
    if batch <= 2 * max_tile:
        half = -(-batch // 2)
        return -(-half // 8) * 8
    return max_tile


def init_params(key):
    ks = jax.random.split(key, 8)
    s = 0.1
    return {
        "conv1_w": s * jax.random.normal(ks[0], (10, 1, 5, 5), jnp.float32),
        "conv1_b": s * jax.random.normal(ks[1], (10,), jnp.float32),
        "conv2_w": s * jax.random.normal(ks[2], (20, 10, 5, 5), jnp.float32),
        "conv2_b": s * jax.random.normal(ks[3], (20,), jnp.float32),
        "fc1_w":   s * jax.random.normal(ks[4], (50, 320), jnp.float32),
        "fc1_b":   s * jax.random.normal(ks[5], (50,), jnp.float32),
        "fc2_w":   s * jax.random.normal(ks[6], (10, 50), jnp.float32),
        "fc2_b":   s * jax.random.normal(ks[7], (10,), jnp.float32),
    }


def cnn_forward(x, params, *, max_batch_tile=64):
    x = x.reshape(-1, 1, 28, 28).astype(jnp.float32)            # x.view(-1, 1, 28, 28)
    B = x.shape[0]
    bt = _choose_batch_tile(B, max_batch_tile)
    nb = -(-B // bt)
    b_pad = nb * bt
    if b_pad != B:
        x = jnp.pad(x, ((0, b_pad - B), (0, 0), (0, 0), (0, 0)))

    # ---- conv1 (1->10, k=5) + maxpool2 + relu : one fused kernel ----
    p1, ph1, pw1 = _pool_im2col(x, 5)                            # (4, 25, b_pad*144)
    p1 = _pad_axis(p1, 1, 32).astype(jnp.bfloat16)               # K: 25 -> 32 (MXU tile)
    w1 = _pad_axis(params["conv1_w"].reshape(10, 25), 1, 32)     # Cout 10 -> 16 below
    w1 = _pad_axis(w1, 0, 16).astype(jnp.bfloat16)
    b1 = _pad_axis(params["conv1_b"].reshape(10, 1), 0, 16).astype(jnp.float32)
    y1 = _conv_pool_relu(p1, w1, b1, n_cols_tile=bt * ph1 * pw1, nb=nb)  # (16, b_pad*144)
    y1 = y1[:10].reshape(10, b_pad, ph1, pw1).transpose(1, 0, 2, 3)      # (b_pad,10,12,12)

    # ---- conv2 (10->20, k=5) + Dropout2d(identity) + maxpool2 + relu ----
    p2, ph2, pw2 = _pool_im2col(y1, 5)                           # (4, 250, b_pad*16)
    p2 = _pad_axis(p2, 1, 256).astype(jnp.bfloat16)              # K: 250 -> 256
    w2 = _pad_axis(params["conv2_w"].reshape(20, 250), 1, 256)   # Cout 20 -> 32 below
    w2 = _pad_axis(w2, 0, 32).astype(jnp.bfloat16)
    b2 = _pad_axis(params["conv2_b"].reshape(20, 1), 0, 32).astype(jnp.float32)
    y2 = _conv_pool_relu(p2, w2, b2, n_cols_tile=bt * ph2 * pw2, nb=nb)  # (32, b_pad*16)

    # ---- flatten in PyTorch (C, H, W) order -> (b_pad, 320) ----
    h = y2[:20].reshape(20, b_pad, ph2 * pw2).transpose(1, 0, 2).reshape(b_pad, 320)
    h = h.astype(jnp.bfloat16)

    # ---- fc1 + relu + dropout(identity) + fc2 + softmax : one fused kernel ----
    w1fc = _pad_axis(params["fc1_w"].T, 1, 64).astype(jnp.bfloat16)       # (320, 64)
    b1fc = _pad_axis(params["fc1_b"].reshape(1, 50), 1, 64).astype(jnp.float32)
    w2fc = _pad_axis(_pad_axis(params["fc2_w"].T, 0, 64), 1, 128).astype(jnp.bfloat16)
    b2fc = jnp.full((1, 128), -1e9, jnp.float32)
    b2fc = b2fc.at[0, :10].set(params["fc2_b"].astype(jnp.float32))
    out = _fc_softmax(h, w1fc, b1fc, w2fc, b2fc, tb=bt, nb=nb)   # (b_pad, 128)
    return out[:B, :10]


def cnn_reference(x, params):
    """Pure-XLA reference (no Pallas) for correctness checking."""
    x = x.reshape(-1, 1, 28, 28).astype(jnp.float32)
    dn = ("NCHW", "OIHW", "NCHW")
    y = jax.lax.conv_general_dilated(x, params["conv1_w"], (1, 1), "VALID",
                                     dimension_numbers=dn)
    y = y + params["conv1_b"][None, :, None, None]
    y = jax.lax.reduce_window(y, -jnp.inf, jax.lax.max, (1, 1, 2, 2), (1, 1, 2, 2), "VALID")
    y = jnp.maximum(y, 0.0)
    y = jax.lax.conv_general_dilated(y, params["conv2_w"], (1, 1), "VALID",
                                     dimension_numbers=dn)
    y = y + params["conv2_b"][None, :, None, None]
    y = jax.lax.reduce_window(y, -jnp.inf, jax.lax.max, (1, 1, 2, 2), (1, 1, 2, 2), "VALID")
    y = jnp.maximum(y, 0.0)
    h = y.reshape(y.shape[0], 320)
    h = jnp.maximum(h @ params["fc1_w"].T + params["fc1_b"], 0.0)
    z = h @ params["fc2_w"].T + params["fc2_b"]
    return jax.nn.softmax(z, axis=1)


if __name__ == "__main__":
    key = jax.random.PRNGKey(0)
    k_param, k_x = jax.random.split(key)
    params = init_params(k_param)

    # Small deterministic test (batch=2): full numerical check vs pure-XLA reference.
    x = jax.random.normal(k_x, (2, 1, 28, 28), jnp.float32)
    fwd = jax.jit(lambda xx: cnn_forward(xx, params))
    out = jax.block_until_ready(fwd(x))
    assert out.shape == (2, 10)
    assert bool(jnp.all(jnp.isfinite(out)))
    assert bool(jnp.allclose(jnp.sum(out, axis=1), 1.0, atol=1e-3))
    ref = jax.jit(lambda xx: cnn_reference(xx, params))(x)
    assert bool(jnp.allclose(out, ref, atol=2e-2))   # bf16 MXU operands -> loose tol

    # Larger batch exercises the multi-step "parallel" grid (2 tiles of 48).
    xb = jax.random.normal(jax.random.PRNGKey(1), (96, 1, 28, 28), jnp.float32)
    outb = jax.block_until_ready(jax.jit(lambda xx: cnn_forward(xx, params))(xb))
    assert outb.shape == (96, 10)
    assert bool(jnp.all(jnp.isfinite(outb)))
    assert bool(jnp.allclose(jnp.sum(outb, axis=1), 1.0, atol=1e-3))

    print("KERNEL_OK")
</pallas_src>

<mosaic_0001>
module attributes {stable_mosaic.version = 11 : i64} {
  func.func @_conv_pool_relu_kernel(%arg0: i32, %arg1: memref<4x32x1152xbf16, #tpu.memory_space<vmem>>, %arg2: memref<16x32xbf16, #tpu.memory_space<vmem>>, %arg3: memref<16x1xf32, #tpu.memory_space<vmem>>, %arg4: memref<16x1152xbf16, #tpu.memory_space<vmem>>) attributes {dimension_semantics = [#tpu.dimension_semantics<parallel>], iteration_bounds = array<i64: 1>, scalar_prefetch = 0 : i64, scratch_operands = 0 : i64, tpu.core_type = #tpu.core_type<tc>, window_params = [{transform_indices = @transform_0, window_bounds = array<i64: 4, 32, 1152>}, {pipeline_mode = #tpu.pipeline_mode<synchronous>, transform_indices = @transform_1, window_bounds = array<i64: 16, 32>}, {pipeline_mode = #tpu.pipeline_mode<synchronous>, transform_indices = @transform_2, window_bounds = array<i64: 16, 1>}, {transform_indices = @transform_3, window_bounds = array<i64: 16, 1152>}]} {
    %c0 = arith.constant 0 : index
    %c0_0 = arith.constant 0 : index
    %0 = vector.load %arg2[%c0, %c0_0] : memref<16x32xbf16, #tpu.memory_space<vmem>>, vector<16x32xbf16>
    %c0_1 = arith.constant 0 : index
    %c0_2 = arith.constant 0 : index
    %c0_3 = arith.constant 0 : index
    %1 = vector.load %arg1[%c0_1, %c0_2, %c0_3] : memref<4x32x1152xbf16, #tpu.memory_space<vmem>>, vector<1x32x1152xbf16>
    %2 = vector.shape_cast %1 : vector<1x32x1152xbf16> to vector<32x1152xbf16>
    %cst = arith.constant dense<0.000000e+00> : vector<16x1152xf32>
    %3 = tpu.matmul %0, %2, %cst {dimension_numbers = #tpu.dot_dimension_numbers<[1], [0], [0], [1], [0, 0, 1, 1], [], []>} : vector<16x32xbf16>, vector<32x1152xbf16>, vector<16x1152xf32> -> vector<16x1152xf32>
    %c1 = arith.constant 1 : index
    %c0_4 = arith.constant 0 : index
    %c0_5 = arith.constant 0 : index
    %4 = vector.load %arg1[%c1, %c0_4, %c0_5] : memref<4x32x1152xbf16, #tpu.memory_space<vmem>>, vector<1x32x1152xbf16>
    %5 = vector.shape_cast %4 : vector<1x32x1152xbf16> to vector<32x1152xbf16>
    %cst_6 = arith.constant dense<0.000000e+00> : vector<16x1152xf32>
    %6 = tpu.matmul %0, %5, %cst_6 {dimension_numbers = #tpu.dot_dimension_numbers<[1], [0], [0], [1], [0, 0, 1, 1], [], []>} : vector<16x32xbf16>, vector<32x1152xbf16>, vector<16x1152xf32> -> vector<16x1152xf32>
    %7 = arith.maximumf %3, %6 : vector<16x1152xf32>
    %c2 = arith.constant 2 : index
    %c0_7 = arith.constant 0 : index
    %c0_8 = arith.constant 0 : index
    %8 = vector.load %arg1[%c2, %c0_7, %c0_8] : memref<4x32x1152xbf16, #tpu.memory_space<vmem>>, vector<1x32x1152xbf16>
    %9 = vector.shape_cast %8 : vector<1x32x1152xbf16> to vector<32x1152xbf16>
    %cst_9 = arith.constant dense<0.000000e+00> : vector<16x1152xf32>
    %10 = tpu.matmul %0, %9, %cst_9 {dimension_numbers = #tpu.dot_dimension_numbers<[1], [0], [0], [1], [0, 0, 1, 1], [], []>} : vector<16x32xbf16>, vector<32x1152xbf16>, vector<16x1152xf32> -> vector<16x1152xf32>
    %11 = arith.maximumf %7, %10 : vector<16x1152xf32>
    %c3 = arith.constant 3 : index
    %c0_10 = arith.constant 0 : index
    %c0_11 = arith.constant 0 : index
    %12 = vector.load %arg1[%c3, %c0_10, %c0_11] : memref<4x32x1152xbf16, #tpu.memory_space<vmem>>, vector<1x32x1152xbf16>
    %13 = vector.shape_cast %12 : vector<1x32x1152xbf16> to vector<32x1152xbf16>
    %cst_12 = arith.constant dense<0.000000e+00> : vector<16x1152xf32>
    %14 = tpu.matmul %0, %13, %cst_12 {dimension_numbers = #tpu.dot_dimension_numbers<[1], [0], [0], [1], [0, 0, 1, 1], [], []>} : vector<16x32xbf16>, vector<32x1152xbf16>, vector<16x1152xf32> -> vector<16x1152xf32>
    %15 = arith.maximumf %11, %14 : vector<16x1152xf32>
    %c0_13 = arith.constant 0 : index
    %c0_14 = arith.constant 0 : index
    %16 = vector.load %arg3[%c0_13, %c0_14] : memref<16x1xf32, #tpu.memory_space<vmem>>, vector<16x1xf32>
    %17 = vector.broadcast %16 : vector<16x1xf32> to vector<16x1152xf32>
    %18 = arith.addf %15, %17 : vector<16x1152xf32>
    %cst_15 = arith.constant 0.000000e+00 : f32
    %19 = vector.broadcast %cst_15 : f32 to vector<16x1152xf32>
    %20 = arith.maximumf %18, %19 : vector<16x1152xf32>
    %21 = arith.truncf %20 : vector<16x1152xf32> to vector<16x1152xbf16>
    %c0_16 = arith.constant 0 : index
    %c0_17 = arith.constant 0 : index
    %22 = vector.load %arg4[%c0_16, %c0_17] : memref<16x1152xbf16, #tpu.memory_space<vmem>>, vector<16x1152xbf16>
    tpu.vector_store %arg4[%c0_16, %c0_17], %21 {strides = array<i32>} : memref<16x1152xbf16, #tpu.memory_space<vmem>>, vector<16x1152xbf16>,
    return
  }
  func.func @transform_0(%arg0: i32) -> (i32, i32, i32) {
    %c0_i32 = arith.constant 0 : i32
    %c0_i32_0 = arith.constant 0 : i32
    %c0_i32_1 = arith.constant 0 : i32
    return %c0_i32, %c0_i32_0, %arg0 : i32, i32, i32
  }
  func.func @transform_1(%arg0: i32) -> (i32, i32) {
    %c0_i32 = arith.constant 0 : i32
    %c0_i32_0 = arith.constant 0 : i32
    %c0_i32_1 = arith.constant 0 : i32
    return %c0_i32, %c0_i32_0 : i32, i32
  }
  func.func @transform_2(%arg0: i32) -> (i32, i32) {
    %c0_i32 = arith.constant 0 : i32
    %c0_i32_0 = arith.constant 0 : i32
    %c0_i32_1 = arith.constant 0 : i32
    return %c0_i32, %c0_i32_0 : i32, i32
  }
  func.func @transform_3(%arg0: i32) -> (i32, i32) {
    %c0_i32 = arith.constant 0 : i32
    %c0_i32_0 = arith.constant 0 : i32
    return %c0_i32, %arg0 : i32, i32
  }
}

module attributes {stable_mosaic.version = 11 : i64} {
  func.func @_conv_pool_relu_kernel(%arg0: i32, %arg1: memref<4x256x128xbf16, #tpu.memory_space<vmem>>, %arg2: memref<32x256xbf16, #tpu.memory_space<vmem>>, %arg3: memref<32x1xf32, #tpu.memory_space<vmem>>, %arg4: memref<32x128xbf16, #tpu.memory_space<vmem>>) attributes {dimension_semantics = [#tpu.dimension_semantics<parallel>], iteration_bounds = array<i64: 1>, scalar_prefetch = 0 : i64, scratch_operands = 0 : i64, tpu.core_type = #tpu.core_type<tc>, window_params = [{transform_indices = @transform_0, window_bounds = array<i64: 4, 256, 128>}, {pipeline_mode = #tpu.pipeline_mode<synchronous>, transform_indices = @transform_1, window_bounds = array<i64: 32, 256>}, {pipeline_mode = #tpu.pipeline_mode<synchronous>, transform_indices = @transform_2, window_bounds = array<i64: 32, 1>}, {transform_indices = @transform_3, window_bounds = array<i64: 32, 128>}]} {
    %c0 = arith.constant 0 : index
    %c0_0 = arith.constant 0 : index
    %0 = vector.load %arg2[%c0, %c0_0] : memref<32x256xbf16, #tpu.memory_space<vmem>>, vector<32x256xbf16>
    %c0_1 = arith.constant 0 : index
    %c0_2 = arith.constant 0 : index
    %c0_3 = arith.constant 0 : index
    %1 = vector.load %arg1[%c0_1, %c0_2, %c0_3] : memref<4x256x128xbf16, #tpu.memory_space<vmem>>, vector<1x256x128xbf16>
    %2 = vector.shape_cast %1 : vector<1x256x128xbf16> to vector<256x128xbf16>
    %cst = arith.constant dense<0.000000e+00> : vector<32x128xf32>
    %3 = tpu.matmul %0, %2, %cst {dimension_numbers = #tpu.dot_dimension_numbers<[1], [0], [0], [1], [0, 0, 1, 1], [], []>} : vector<32x256xbf16>, vector<256x128xbf16>, vector<32x128xf32> -> vector<32x128xf32>
    %c1 = arith.constant 1 : index
    %c0_4 = arith.constant 0 : index
    %c0_5 = arith.constant 0 : index
    %4 = vector.load %arg1[%c1, %c0_4, %c0_5] : memref<4x256x128xbf16, #tpu.memory_space<vmem>>, vector<1x256x128xbf16>
    %5 = vector.shape_cast %4 : vector<1x256x128xbf16> to vector<256x128xbf16>
    %cst_6 = arith.constant dense<0.000000e+00> : vector<32x128xf32>
    %6 = tpu.matmul %0, %5, %cst_6 {dimension_numbers = #tpu.dot_dimension_numbers<[1], [0], [0], [1], [0, 0, 1, 1], [], []>} : vector<32x256xbf16>, vector<256x128xbf16>, vector<32x128xf32> -> vector<32x128xf32>
    %7 = arith.maximumf %3, %6 : vector<32x128xf32>
    %c2 = arith.constant 2 : index
    %c0_7 = arith.constant 0 : index
    %c0_8 = arith.constant 0 : index
    %8 = vector.load %arg1[%c2, %c0_7, %c0_8] : memref<4x256x128xbf16, #tpu.memory_space<vmem>>, vector<1x256x128xbf16>
    %9 = vector.shape_cast %8 : vector<1x256x128xbf16> to vector<256x128xbf16>
    %cst_9 = arith.constant dense<0.000000e+00> : vector<32x128xf32>
    %10 = tpu.matmul %0, %9, %cst_9 {dimension_numbers = #tpu.dot_dimension_numbers<[1], [0], [0], [1], [0, 0, 1, 1], [], []>} : vector<32x256xbf16>, vector<256x128xbf16>, vector<32x128xf32> -> vector<32x128xf32>
    %11 = arith.maximumf %7, %10 : vector<32x128xf32>
    %c3 = arith.constant 3 : index
    %c0_10 = arith.constant 0 : index
    %c0_11 = arith.constant 0 : index
    %12 = vector.load %arg1[%c3, %c0_10, %c0_11] : memref<4x256x128xbf16, #tpu.memory_space<vmem>>, vector<1x256x128xbf16>
    %13 = vector.shape_cast %12 : vector<1x256x128xbf16> to vector<256x128xbf16>
    %cst_12 = arith.constant dense<0.000000e+00> : vector<32x128xf32>
    %14 = tpu.matmul %0, %13, %cst_12 {dimension_numbers = #tpu.dot_dimension_numbers<[1], [0], [0], [1], [0, 0, 1, 1], [], []>} : vector<32x256xbf16>, vector<256x128xbf16>, vector<32x128xf32> -> vector<32x128xf32>
    %15 = arith.maximumf %11, %14 : vector<32x128xf32>
    %c0_13 = arith.constant 0 : index
    %c0_14 = arith.constant 0 : index
    %16 = vector.load %arg3[%c0_13, %c0_14] : memref<32x1xf32, #tpu.memory_space<vmem>>, vector<32x1xf32>
    %17 = vector.broadcast %16 : vector<32x1xf32> to vector<32x128xf32>
    %18 = arith.addf %15, %17 : vector<32x128xf32>
    %cst_15 = arith.constant 0.000000e+00 : f32
    %19 = vector.broadcast %cst_15 : f32 to vector<32x128xf32>
    %20 = arith.maximumf %18, %19 : vector<32x128xf32>
    %21 = arith.truncf %20 : vector<32x128xf32> to vector<32x128xbf16>
    %c0_16 = arith.constant 0 : index
    %c0_17 = arith.constant 0 : index
    %22 = vector.load %arg4[%c0_16, %c0_17] : memref<32x128xbf16, #tpu.memory_space<vmem>>, vector<32x128xbf16>
    tpu.vector_store %arg4[%c0_16, %c0_17], %21 {strides = array<i32>} : memref<32x128xbf16, #tpu.memory_space<vmem>>, vector<32x128xbf16>,
    return
  }
  func.func @transform_0(%arg0: i32) -> (i32, i32, i32) {
    %c0_i32 = arith.constant 0 : i32
    %c0_i32_0 = arith.constant 0 : i32
    %c0_i32_1 = arith.constant 0 : i32
    return %c0_i32, %c0_i32_0, %arg0 : i32, i32, i32
  }
  func.func @transform_1(%arg0: i32) -> (i32, i32) {
    %c0_i32 = arith.constant 0 : i32
    %c0_i32_0 = arith.constant 0 : i32
    %c0_i32_1 = arith.constant 0 : i32
    return %c0_i32, %c0_i32_0 : i32, i32
  }
  func.func @transform_2(%arg0: i32) -> (i32, i32) {
    %c0_i32 = arith.constant 0 : i32
    %c0_i32_0 = arith.constant 0 : i32
    %c0_i32_1 = arith.constant 0 : i32
    return %c0_i32, %c0_i32_0 : i32, i32
  }
  func.func @transform_3(%arg0: i32) -> (i32, i32) {
    %c0_i32 = arith.constant 0 : i32
    %c0_i32_0 = arith.constant 0 : i32
    return %c0_i32, %arg0 : i32, i32
  }
}

module attributes {stable_mosaic.version = 11 : i64} {
  func.func @_fc_softmax_kernel(%arg0: i32, %arg1: memref<8x320xbf16, #tpu.memory_space<vmem>>, %arg2: memref<320x64xbf16, #tpu.memory_space<vmem>>, %arg3: memref<1x64xf32, #tpu.memory_space<vmem>>, %arg4: memref<64x128xbf16, #tpu.memory_space<vmem>>, %arg5: memref<1x128xf32, #tpu.memory_space<vmem>>, %arg6: memref<8x128xf32, #tpu.memory_space<vmem>>) attributes {dimension_semantics = [#tpu.dimension_semantics<parallel>], iteration_bounds = array<i64: 1>, scalar_prefetch = 0 : i64, scratch_operands = 0 : i64, tpu.core_type = #tpu.core_type<tc>, window_params = [{transform_indices = @transform_0, window_bounds = array<i64: 8, 320>}, {pipeline_mode = #tpu.pipeline_mode<synchronous>, transform_indices = @transform_1, window_bounds = array<i64: 320, 64>}, {pipeline_mode = #tpu.pipeline_mode<synchronous>, transform_indices = @transform_2, window_bounds = array<i64: 1, 64>}, {pipeline_mode = #tpu.pipeline_mode<synchronous>, transform_indices = @transform_3, window_bounds = array<i64: 64, 128>}, {pipeline_mode = #tpu.pipeline_mode<synchronous>, transform_indices = @transform_4, window_bounds = array<i64: 1, 128>}, {transform_indices = @transform_5, window_bounds = array<i64: 8, 128>}]} {
    %c0 = arith.constant 0 : index
    %c0_0 = arith.constant 0 : index
    %0 = vector.load %arg1[%c0, %c0_0] : memref<8x320xbf16, #tpu.memory_space<vmem>>, vector<8x320xbf16>
    %c0_1 = arith.constant 0 : index
    %c0_2 = arith.constant 0 : index
    %1 = vector.load %arg2[%c0_1, %c0_2] : memref<320x64xbf16, #tpu.memory_space<vmem>>, vector<320x64xbf16>
    %cst = arith.constant dense<0.000000e+00> : vector<8x64xf32>
    %2 = tpu.matmul %0, %1, %cst {dimension_numbers = #tpu.dot_dimension_numbers<[1], [0], [0], [1], [0, 0, 1, 1], [], []>} : vector<8x320xbf16>, vector<320x64xbf16>, vector<8x64xf32> -> vector<8x64xf32>
    %c0_3 = arith.constant 0 : index
    %c0_4 = arith.constant 0 : index
    %3 = vector.load %arg3[%c0_3, %c0_4] : memref<1x64xf32, #tpu.memory_space<vmem>>, vector<1x64xf32>
    %4 = vector.broadcast %3 : vector<1x64xf32> to vector<8x64xf32>
    %5 = arith.addf %2, %4 : vector<8x64xf32>
    %cst_5 = arith.constant 0.000000e+00 : f32
    %6 = vector.broadcast %cst_5 : f32 to vector<8x64xf32>
    %7 = arith.maximumf %5, %6 : vector<8x64xf32>
    %8 = arith.truncf %7 : vector<8x64xf32> to vector<8x64xbf16>
    %c0_6 = arith.constant 0 : index
    %c0_7 = arith.constant 0 : index
    %9 = vector.load %arg4[%c0_6, %c0_7] : memref<64x128xbf16, #tpu.memory_space<vmem>>, vector<64x128xbf16>
    %cst_8 = arith.constant dense<0.000000e+00> : vector<8x128xf32>
    %10 = tpu.matmul %8, %9, %cst_8 {dimension_numbers = #tpu.dot_dimension_numbers<[1], [0], [0], [1], [0, 0, 1, 1], [], []>} : vector<8x64xbf16>, vector<64x128xbf16>, vector<8x128xf32> -> vector<8x128xf32>
    %c0_9 = arith.constant 0 : index
    %c0_10 = arith.constant 0 : index
    %11 = vector.load %arg5[%c0_9, %c0_10] : memref<1x128xf32, #tpu.memory_space<vmem>>, vector<1x128xf32>
    %12 = vector.broadcast %11 : vector<1x128xf32> to vector<8x128xf32>
    %13 = arith.addf %10, %12 : vector<8x128xf32>
    %cst_11 = arith.constant dense<0xFF800000> : vector<8xf32>
    %14 = vector.multi_reduction <maximumf>, %13, %cst_11 [1] : vector<8x128xf32> to vector<8xf32>
    %15 = vector.shape_cast %14 : vector<8xf32> to vector<8x1xf32>
    %16 = vector.broadcast %15 : vector<8x1xf32> to vector<8x128xf32>
    %17 = arith.subf %13, %16 : vector<8x128xf32>
    %18 = math.exp %17 : vector<8x128xf32>
    %cst_12 = arith.constant dense<0.000000e+00> : vector<8xf32>
    %19 = vector.multi_reduction <add>, %18, %cst_12 [1] : vector<8x128xf32> to vector<8xf32>
    %20 = vector.shape_cast %19 : vector<8xf32> to vector<8x1xf32>
    %21 = vector.broadcast %20 : vector<8x1xf32> to vector<8x128xf32>
    %22 = arith.divf %18, %21 : vector<8x128xf32>
    %c0_13 = arith.constant 0 : index
    %c0_14 = arith.constant 0 : index
    %23 = vector.load %arg6[%c0_13, %c0_14] : memref<8x128xf32, #tpu.memory_space<vmem>>, vector<8x128xf32>
    tpu.vector_store %arg6[%c0_13, %c0_14], %22 {strides = array<i32>} : memref<8x128xf32, #tpu.memory_space<vmem>>, vector<8x128xf32>,
    return
  }
  func.func @transform_0(%arg0: i32) -> (i32, i32) {
    %c0_i32 = arith.constant 0 : i32
    %c0_i32_0 = arith.constant 0 : i32
    return %arg0, %c0_i32 : i32, i32
  }
  func.func @transform_1(%arg0: i32) -> (i32, i32) {
    %c0_i32 = arith.constant 0 : i32
    %c0_i32_0 = arith.constant 0 : i32
    %c0_i32_1 = arith.constant 0 : i32
    return %c0_i32, %c0_i32_0 : i32, i32
  }
  func.func @transform_2(%arg0: i32) -> (i32, i32) {
    %c0_i32 = arith.constant 0 : i32
    %c0_i32_0 = arith.constant 0 : i32
    %c0_i32_1 = arith.constant 0 : i32
    return %c0_i32, %c0_i32_0 : i32, i32
  }
  func.func @transform_3(%arg0: i32) -> (i32, i32) {
    %c0_i32 = arith.constant 0 : i32
    %c0_i32_0 = arith.constant 0 : i32
    %c0_i32_1 = arith.constant 0 : i32
    return %c0_i32, %c0_i32_0 : i32, i32
  }
  func.func @transform_4(%arg0: i32) -> (i32, i32) {
    %c0_i32 = arith.constant 0 : i32
    %c0_i32_0 = arith.constant 0 : i32
    %c0_i32_1 = arith.constant 0 : i32
    return %c0_i32, %c0_i32_0 : i32, i32
  }
  func.func @transform_5(%arg0: i32) -> (i32, i32) {
    %c0_i32 = arith.constant 0 : i32
    %c0_i32_0 = arith.constant 0 : i32
    return %arg0, %c0_i32 : i32, i32
  }
}

</mosaic_0001>

<bundles_post_ra>
// kernel: _lambda_.3
= control target key start
LH: loop header
LB: loop body
LE: loop exit
PB: predicated region body
PF: predicated region fallthrough
CT: control target
= control target key end

     0   :  { %v1827_v1 = vmov 0   ;;  %vm134_vm0 = vcmask 261120   ;;  %v1828_v21 = vmov 0.0   ;;  %vm1829_vm1 = vmmov 0   ;;  %s2322_s0 = inlined_call_operand.vmem [shape: bf16[4,32,1152], index: 0, kind: input, shape index: {}]   ;;  %s2323_s1 = inlined_call_operand.vmem [shape: bf16[16,32], index: 1, kind: input, shape index: {}]   ;;  %s2324_s2 = inlined_call_operand.vmem [shape: f32[16,1], index: 2, kind: input, shape index: {}]   ;;  %s2325_s3 = inlined_call_operand.vmem [shape: bf16[16,1152], index: 3, kind: output, shape index: {}]  }
   0x1   :  { %v1722_v0 = vld [vmem:[%s2322_s0 + $0x4c] ss:$36 sps:$4 sm:$0xff]   ;;  %170 = vmatprep.mubr.bf16.mxu0 %v1827_v1  ;;  %213 = vmatprep.mubr.bf16.mxu1 %v1827_v1  ;;  %v1724_v2 = vld [vmem:[%s2322_s0 + $0x54] ss:$36 sps:$4 sm:$0xff]   ;;  %v1728_v5 = vld [vmem:[%s2322_s0 + $0x4] ss:$36 sps:$4 sm:$0xff]  }
   0x2   :  { %1721 = vset.pattern.permute.xlu0 %v1827_v1  ;;  %150 = vmatprep.subr.bf16.mxu0 %v1722_v0  ;;  %v1726_v3 = vld [vmem:[%s2322_s0 + $0x48] ss:$36 sps:$4 sm:$0xff]   ;;  %v1727_v4 = vld [vmem:[%s2322_s0 + $0x50] ss:$36 sps:$4 sm:$0xff]   ;;  %v1732_v7 = vld [vmem:[%s2322_s0] ss:$36 sps:$4 sm:$0xff]  }
   0x3   :  { %193 = vmatprep.subr.bf16.mxu1 %v1724_v2  ;;  %151 = vmatpush1.bf16.msra.mxu0 %v1726_v3  ;;  %v1730_v6 = vld [vmem:[%s2322_s0 + $0xc] ss:$36 sps:$4 sm:$0xff]   ;;  %v1880_v9 = vld [vmem:[%s2323_s1] sm:$0xff]   ;;  %v1735_v10 = vld [vmem:[%s2322_s0 + $0x58] ss:$36 sps:$4 sm:$0xff]  }
   0x4   :  { %194 = vmatpush1.bf16.msra.mxu1 %v1727_v4  ;;  %152 = vmatprep.subr.bf16.mxu0 %v1728_v5  ;;  %v1733_v8 = vld [vmem:[%s2322_s0 + $0x8] ss:$36 sps:$4 sm:$0xff]   ;;  %v1737_v11 = vld [vmem:[%s2322_s0 + $0x5c] ss:$36 sps:$4 sm:$0xff]   ;;  %v1743_v14 = vld [vmem:[%s2322_s0 + $0x14] ss:$36 sps:$4 sm:$0xff]  }
   0x5   :  { %195 = vmatprep.subr.bf16.mxu1 %v1730_v6  ;;  %v1738_v12 = vld [vmem:[%s2322_s0 + $0x60] ss:$36 sps:$4 sm:$0xff]   ;;  %v1741_v16 = vld [vmem:[%s2322_s0 + $0x10] ss:$36 sps:$4 sm:$0xff]   ;;  %v1744_v17 = vld [vmem:[%s2322_s0 + $0x18] ss:$36 sps:$4 sm:$0xff]  }
   0x6   :  { %v1740_v13 = vld [vmem:[%s2322_s0 + $0x64] ss:$36 sps:$4 sm:$0xff]   ;;  %v1746_v15 = vld [vmem:[%s2322_s0 + $0x1c] ss:$36 sps:$4 sm:$0xff]   ;;  %v1753_v22 = vld [vmem:[%s2322_s0 + $0x94] ss:$36 sps:$4 sm:$0xff]  }
   0x7   :  { %153 = vmatpush1.bf16.msra.mxu0 %v1732_v7  ;;  %v1749_v18 = vld [vmem:[%s2322_s0 + $0xdc] ss:$36 sps:$4 sm:$0xff]   ;;  %v1750_v20 = vld [vmem:[%s2322_s0 + $0x68] ss:$36 sps:$4 sm:$0xff]   ;;  %v1751_v23 = vld [vmem:[%s2322_s0 + $0x90] ss:$36 sps:$4 sm:$0xff]  }
   0x8   :  { %196 = vmatpush1.bf16.msra.mxu1 %v1733_v8  ;;  %236 = vmatprep.subr.bf16.mxu0 %v1737_v11  ;;  %v1747_v19 = vld [vmem:[%s2322_s0 + $0xd8] ss:$36 sps:$4 sm:$0xff]   ;;  %v1754_v24 = vld [vmem:[%s2322_s0 + $0x20] ss:$36 sps:$4 sm:$0xff]   ;;  %v1760_v26 = vld [vmem:[%s2322_s0 + $0xec] ss:$36 sps:$4 sm:$0xff]  }
   0x9   :  { %279 = vmatprep.subr.bf16.mxu1 %v1740_v13  ;;  %v1757_v25 = vld [vmem:[%s2322_s0 + $0xe4] ss:$36 sps:$4 sm:$0xff]   ;;  %v1763_v29 = vld [vmem:[%s2322_s0 + $0x9c] ss:$36 sps:$4 sm:$0xff]   ;;  %v1769_v33 = vld [vmem:[%s2322_s0 + $0xf4] ss:$36 sps:$4 sm:$0xff]  }
   0xa   :  { %1520 = vmatmul.mubr.msk.bf16.vlgmr.msra.gmra.mxu0 %vm134_vm0, %v1880_v9  ;;  %v1755_v27 = vld [vmem:[%s2322_s0 + $0xe0] ss:$36 sps:$4 sm:$0xff]   ;;  %v1758_v28 = vld [vmem:[%s2322_s0 + $0xe8] ss:$36 sps:$4 sm:$0xff]   ;;  %v1761_v31 = vld [vmem:[%s2322_s0 + $0x98] ss:$36 sps:$4 sm:$0xff]  }
   0xb   :  { %1521 = vmatmul.mubr.msk.bf16.vlgmr.msra.gmra.mxu1 %vm134_vm0, %v1880_v9  ;;  %237 = vmatpush1.bf16.msra.mxu0 %v1735_v10  ;;  %v1766_v30 = vld [vmem:[%s2322_s0 + $0xa4] ss:$36 sps:$4 sm:$0xff]   ;;  %v1767_v34 = vld [vmem:[%s2322_s0 + $0xf0] ss:$36 sps:$4 sm:$0xff]   ;;  %v1770_v35 = vld [vmem:[%s2322_s0 + $0xf8] ss:$36 sps:$4 sm:$0xff]  }
   0xc   :  { %280 = vmatpush1.bf16.msra.mxu1 %v1738_v12  ;;  %238 = vmatprep.subr.bf16.mxu0 %v1743_v14  ;;  %v1764_v32 = vld [vmem:[%s2322_s0 + $0xa0] ss:$36 sps:$4 sm:$0xff]   ;;  %v1773_v36 = vld [vmem:[%s2322_s0 + $0xac] ss:$36 sps:$4 sm:$0xff]   ;;  %v1780_v40 = vld [vmem:[%s2322_s0 + $0x174] ss:$36 sps:$4 sm:$0xff]  }
   0xd   :  { %281 = vmatprep.subr.bf16.mxu1 %v1746_v15  ;;  %256 = vmatprep.mubr.bf16.mxu0 %v1827_v1  ;;  %v1771_v37 = vld [vmem:[%s2322_s0 + $0xa8] ss:$36 sps:$4 sm:$0xff]   ;;  %v1774_v38 = vld [vmem:[%s2322_s0 + $0xb0] ss:$36 sps:$4 sm:$0xff]   ;;  %v1781_v45 = vld [vmem:[%s2322_s0 + $0x120] ss:$36 sps:$4 sm:$0xff]  }
   0xe   :  { %299 = vmatprep.mubr.bf16.mxu1 %v1827_v1  ;;  %v1777_v39 = vld [vmem:[%s2322_s0 + $0x16c] ss:$36 sps:$4 sm:$0xff]   ;;  %v1783_v43 = vld [vmem:[%s2322_s0 + $0x124] ss:$36 sps:$4 sm:$0xff]   ;;  %v1789_v47 = vld [vmem:[%s2322_s0 + $0x17c] ss:$36 sps:$4 sm:$0xff]  }
   0xf   :  { %239 = vmatpush1.bf16.msra.mxu0 %v1741_v16  ;;  %v1775_v41 = vld [vmem:[%s2322_s0 + $0x168] ss:$36 sps:$4 sm:$0xff]   ;;  %v1778_v42 = vld [vmem:[%s2322_s0 + $0x170] ss:$36 sps:$4 sm:$0xff]   ;;  %v1787_v49 = vld [vmem:[%s2322_s0 + $0x178] ss:$36 sps:$4 sm:$0xff]  }
  0x10   :  { %282 = vmatpush1.bf16.msra.mxu1 %v1744_v17  ;;  %1686 = vmatprep.subr.bf16.mxu0 %v1828_v21  ;;  %v1786_v44 = vld [vmem:[%s2322_s0 + $0x12c] ss:$36 sps:$4 sm:$0xff]   ;;  %v1792_v48 = vld [vmem:[%s2322_s0 + $0x184] ss:$36 sps:$4 sm:$0xff]   ;;  %v1795_v51 = vld [vmem:[%s2322_s0 + $0x134] ss:$36 sps:$4 sm:$0xff]  }
  0x11   :  { %476 = vmatprep.subr.bf16.mxu1 %v1749_v18  ;;  %v1784_v46 = vld [vmem:[%s2322_s0 + $0x128] ss:$36 sps:$4 sm:$0xff]   ;;  %v1790_v50 = vld [vmem:[%s2322_s0 + $0x180] ss:$36 sps:$4 sm:$0xff]   ;;  %v1793_v53 = vld [vmem:[%s2322_s0 + $0x130] ss:$36 sps:$4 sm:$0xff]  }
  0x12   :  { %1522 = vmatmul.mubr.msk.bf16.vlgmr.msra.gmra.mxu0 %vm134_vm0, %v1880_v9  ;;  %v1798_v52 = vld [vmem:[%s2322_s0 + $0x13c] ss:$36 sps:$4 sm:$0xff]   ;;  %v1802_v58 = vld [vmem:[%s2322_s0 + $0x188] ss:$36 sps:$4 sm:$0xff]   ;;  %v1805_v59 = vld [vmem:[%s2322_s0 + $0x1b4] ss:$36 sps:$4 sm:$0xff]  }
  0x13   :  { %1523 = vmatmul.mubr.msk.bf16.vlgmr.msra.gmra.mxu1 %vm134_vm0, %v1880_v9  ;;  %1687 = vmatpush3.bf16.msra.mxu0 %v1750_v20  ;;  %v1796_v54 = vld [vmem:[%s2322_s0 + $0x138] ss:$36 sps:$4 sm:$0xff]   ;;  %v1383_v55 = vld [vmem:[%s2324_s2] sm:$0xff]  ;;  %v1803_v60 = vld [vmem:[%s2322_s0 + $0x1b0] ss:$36 sps:$4 sm:$0xff]  }
  0x14   :  { %477 = vmatpush1.bf16.msra.mxu1 %v1747_v19  ;;  %1688 = vmatprep.subr.bf16.mxu0 %v1828_v21  ;;  %v1801_v56 = vld [vmem:[%s2322_s0 + $0x1fc] ss:$36 sps:$4 sm:$0xff]   ;;  %v1384_v62 = vld [vmem:[%s2324_s2 + $0x8] sm:$0xff]  ;;  %v1821_v8 = vld [vmem:[%s2322_s0 + $0x214] ss:$36 sps:$4 sm:$0xff]  }
  0x15   :  { %478 = vmatprep.subr.bf16.mxu1 %v1753_v22  ;;  %1690 = vmatprep.mubr.msk.bf16.mxu0 %vm1829_vm1, %v1828_v21  ;;  %v1799_v57 = vld [vmem:[%s2322_s0 + $0x1f8] ss:$36 sps:$4 sm:$0xff]   ;;  %v1806_v61 = vld [vmem:[%s2322_s0 + $0x140] ss:$36 sps:$4 sm:$0xff]   ;;  %v1812_v0 = vld [vmem:[%s2322_s0 + $0x20c] ss:$36 sps:$4 sm:$0xff]  }
  0x16   :  { %496 = vmatprep.mubr.bf16.mxu1 %v1827_v1  ;;  %1387 = vperm.xlu0 %1721, %v1383_v55   ;;  %v1809_v63 = vld [vmem:[%s2322_s0 + $0x204] ss:$36 sps:$4 sm:$0xff]   ;;  %v1815_v4 = vld [vmem:[%s2322_s0 + $0x1bc] ss:$36 sps:$4 sm:$0xff]   ;;  %v1819_v10 = vld [vmem:[%s2322_s0 + $0x210] ss:$36 sps:$4 sm:$0xff]  }
  0x17   :  { %1689 = vmatpush3.bf16.msra.mxu0 %v1754_v24  ;;  %v1807_v2 = vld [vmem:[%s2322_s0 + $0x200] ss:$36 sps:$4 sm:$0xff]   ;;  %v1810_v3 = vld [vmem:[%s2322_s0 + $0x208] ss:$36 sps:$4 sm:$0xff]   ;;  %v1813_v6 = vld [vmem:[%s2322_s0 + $0x1b8] ss:$36 sps:$4 sm:$0xff]  }
  0x18   :  { %479 = vmatpush1.bf16.msra.mxu1 %v1751_v23  ;;  %519 = vmatprep.subr.bf16.mxu0 %v1757_v25  ;;  %v1818_v5 = vld [vmem:[%s2322_s0 + $0x1c4] ss:$36 sps:$4 sm:$0xff]   ;;  %v1822_v11 = vld [vmem:[%s2322_s0 + $0x218] ss:$36 sps:$4 sm:$0xff]   ;;  %v1825_v12 = vld [vmem:[%s2322_s0 + $0x1cc] ss:$36 sps:$4 sm:$0xff]  }
  0x19   :  { %562 = vmatprep.subr.bf16.mxu1 %v1760_v26  ;;  %v1816_v7 = vld [vmem:[%s2322_s0 + $0x1c0] ss:$36 sps:$4 sm:$0xff]   ;;  %v1823_v13 = vld [vmem:[%s2322_s0 + $0x1c8] ss:$36 sps:$4 sm:$0xff]   ;;  %v1826_v14 = vld [vmem:[%s2322_s0 + $0x1d0] ss:$36 sps:$4 sm:$0xff]  }
  0x1a   :  { %1691 = vmatmul.mubr.msk.bf16.vlgmr.msra.gmra.mxu0 %vm134_vm0, %v1880_v9  ;;  %1392 = vperm.xlu0 %1721, %v1384_v62  }
  0x1b   :  { %1563 = vmatmul.mubr.msk.bf16.vlgmr.msra.gmra.mxu1 %vm134_vm0, %v1880_v9  ;;  %520 = vmatpush1.bf16.msra.mxu0 %v1755_v27 }
  0x1c   :  { %563 = vmatpush1.bf16.msra.mxu1 %v1758_v28  ;;  %521 = vmatprep.subr.bf16.mxu0 %v1763_v29 }
  0x1d   :  { %564 = vmatprep.subr.bf16.mxu1 %v1766_v30  ;;  %539 = vmatprep.mubr.bf16.mxu0 %v1827_v1 }
  0x1e   :  { %582 = vmatprep.mubr.bf16.mxu1 %v1827_v1 }
  0x1f   :  { %522 = vmatpush1.bf16.msra.mxu0 %v1761_v31 }
  0x20   :  { %565 = vmatpush1.bf16.msra.mxu1 %v1764_v32  ;;  %605 = vmatprep.subr.bf16.mxu0 %v1769_v33 }
  0x21   :  { %1694 = vmatprep.subr.bf16.mxu1 %v1828_v21 }
  0x22   :  { %1564 = vmatmul.mubr.msk.bf16.vlgmr.msra.gmra.mxu0 %vm134_vm0, %v1880_v9 }
  0x23   :  { %1565 = vmatmul.mubr.msk.bf16.vlgmr.msra.gmra.mxu1 %vm134_vm0, %v1880_v9  ;;  %606 = vmatpush1.bf16.msra.mxu0 %v1767_v34 }
  0x24   :  { %1695 = vmatpush3.bf16.msra.mxu1 %v1770_v35  ;;  %607 = vmatprep.subr.bf16.mxu0 %v1773_v36 }
  0x25   :  { %1696 = vmatprep.subr.bf16.mxu1 %v1828_v21  ;;  %625 = vmatprep.mubr.bf16.mxu0 %v1827_v1 }
  0x26   :  { %1698 = vmatprep.mubr.msk.bf16.mxu1 %vm1829_vm1, %v1828_v21 }
  0x27   :  { %608 = vmatpush1.bf16.msra.mxu0 %v1771_v37 }
  0x28   :  { %1697 = vmatpush3.bf16.msra.mxu1 %v1774_v38  ;;  %820 = vmatprep.subr.bf16.mxu0 %v1777_v39 }
  0x29   :  { %863 = vmatprep.subr.bf16.mxu1 %v1780_v40 }
  0x2a   :  { %1566 = vmatmul.mubr.msk.bf16.vlgmr.msra.gmra.mxu0 %vm134_vm0, %v1880_v9 }
  0x2b   :  { %1699 = vmatmul.mubr.msk.bf16.vlgmr.msra.gmra.mxu1 %vm134_vm0, %v1880_v9  ;;  %821 = vmatpush1.bf16.msra.mxu0 %v1775_v41 }
  0x2c   :  { %864 = vmatpush1.bf16.msra.mxu1 %v1778_v42  ;;  %822 = vmatprep.subr.bf16.mxu0 %v1783_v43 }
  0x2d   :  { %865 = vmatprep.subr.bf16.mxu1 %v1786_v44  ;;  %840 = vmatprep.mubr.bf16.mxu0 %v1827_v1 }
  0x2e   :  { %883 = vmatprep.mubr.bf16.mxu1 %v1827_v1 }
  0x2f   :  { %823 = vmatpush1.bf16.msra.mxu0 %v1781_v45 }
  0x30   :  { %866 = vmatpush1.bf16.msra.mxu1 %v1784_v46  ;;  %906 = vmatprep.subr.bf16.mxu0 %v1789_v47 }
  0x31   :  { %949 = vmatprep.subr.bf16.mxu1 %v1792_v48 }
  0x32   :  { %1606 = vmatmul.mubr.msk.bf16.vlgmr.msra.gmra.mxu0 %vm134_vm0, %v1880_v9 }
  0x33   :  { %1607 = vmatmul.mubr.msk.bf16.vlgmr.msra.gmra.mxu1 %vm134_vm0, %v1880_v9  ;;  %907 = vmatpush1.bf16.msra.mxu0 %v1787_v49 }
  0x34   :  { %950 = vmatpush1.bf16.msra.mxu1 %v1790_v50  ;;  %908 = vmatprep.subr.bf16.mxu0 %v1795_v51 }
  0x35   :  { %951 = vmatprep.subr.bf16.mxu1 %v1798_v52  ;;  %926 = vmatprep.mubr.bf16.mxu0 %v1827_v1 }
  0x36   :  { %969 = vmatprep.mubr.bf16.mxu1 %v1827_v1 }
  0x37   :  { %909 = vmatpush1.bf16.msra.mxu0 %v1793_v53 }
  0x38   :  { %952 = vmatpush1.bf16.msra.mxu1 %v1796_v54  ;;  %1702 = vmatprep.subr.bf16.mxu0 %v1828_v21 }
  0x39   :  { %1164 = vmatprep.subr.bf16.mxu1 %v1801_v56 }
  0x3a   :  { %1608 = vmatmul.mubr.msk.bf16.vlgmr.msra.gmra.mxu0 %vm134_vm0, %v1880_v9 }
  0x3b   :  { %1609 = vmatmul.mubr.msk.bf16.vlgmr.msra.gmra.mxu1 %vm134_vm0, %v1880_v9  ;;  %1703 = vmatpush3.bf16.msra.mxu0 %v1802_v58 }
  0x3c   :  { %1165 = vmatpush1.bf16.msra.mxu1 %v1799_v57  ;;  %1704 = vmatprep.subr.bf16.mxu0 %v1828_v21 }
  0x3d   :  { %1166 = vmatprep.subr.bf16.mxu1 %v1805_v59  ;;  %1706 = vmatprep.mubr.msk.bf16.mxu0 %vm1829_vm1, %v1828_v21 }
  0x3e   :  { %1184 = vmatprep.mubr.bf16.mxu1 %v1827_v1 }
  0x3f   :  { %1705 = vmatpush3.bf16.msra.mxu0 %v1806_v61 }
  0x40   :  { %1167 = vmatpush1.bf16.msra.mxu1 %v1803_v60  ;;  %1207 = vmatprep.subr.bf16.mxu0 %v1809_v63 }
  0x41   :  { %1250 = vmatprep.subr.bf16.mxu1 %v1812_v0 }
  0x42   :  { %1707 = vmatmul.mubr.msk.bf16.vlgmr.msra.gmra.mxu0 %vm134_vm0, %v1880_v9 }
  0x43   :  { %1649 = vmatmul.mubr.msk.bf16.vlgmr.msra.gmra.mxu1 %vm134_vm0, %v1880_v9  ;;  %1208 = vmatpush1.bf16.msra.mxu0 %v1807_v2 }
  0x44   :  { %1251 = vmatpush1.bf16.msra.mxu1 %v1810_v3  ;;  %1209 = vmatprep.subr.bf16.mxu0 %v1815_v4 }
  0x45   :  { %1252 = vmatprep.subr.bf16.mxu1 %v1818_v5  ;;  %1227 = vmatprep.mubr.bf16.mxu0 %v1827_v1 }
  0x46   :  { %1270 = vmatprep.mubr.bf16.mxu1 %v1827_v1 }
  0x47   :  { %1210 = vmatpush1.bf16.msra.mxu0 %v1813_v6 }
  0x48   :  { %1253 = vmatpush1.bf16.msra.mxu1 %v1816_v7  ;;  %1293 = vmatprep.subr.bf16.mxu0 %v1821_v8 }
  0x49   :  { %1710 = vmatprep.subr.bf16.mxu1 %v1828_v21 }
  0x4a   :  { %1650 = vmatmul.mubr.msk.bf16.vlgmr.msra.gmra.mxu0 %vm134_vm0, %v1880_v9 }
  0x4b   :  { %1651 = vmatmul.mubr.msk.bf16.vlgmr.msra.gmra.mxu1 %vm134_vm0, %v1880_v9  ;;  %1294 = vmatpush1.bf16.msra.mxu0 %v1819_v10 }
  0x4c   :  { %1711 = vmatpush3.bf16.msra.mxu1 %v1822_v11  ;;  %1295 = vmatprep.subr.bf16.mxu0 %v1825_v12 }
  0x4d   :  { %1712 = vmatprep.subr.bf16.mxu1 %v1828_v21  ;;  %1313 = vmatprep.mubr.bf16.mxu0 %v1827_v1 }
  0x4e   :  { %1714 = vmatprep.mubr.msk.bf16.mxu1 %vm1829_vm1, %v1828_v21 }
  0x4f   :  { %1296 = vmatpush1.bf16.msra.mxu0 %v1823_v13 }
  0x50   :  { %1713 = vmatpush3.bf16.msra.mxu1 %v1826_v14 }
  0x52   :  { %1652 = vmatmul.mubr.msk.bf16.vlgmr.msra.gmra.mxu0 %vm134_vm0, %v1880_v9 }
  0x53   :  { %1715 = vmatmul.mubr.msk.bf16.vlgmr.msra.gmra.mxu1 %vm134_vm0, %v1880_v9 }
  0x91   :  { %v2220_v5 = vpop.permute.xlu0 %1387 }
  0xca   :  { %v172_v15 = vpop.f32.mrf.mxu0 }
  0xcb   :  { %v2150_v16 = vpop.f32.mrf.mxu1 }
  0xcc   :  { %v174_v17 = vpop.f32.mrf.mxu0 }
  0xcd   :  { %v2152_v18 = vpop.f32.mrf.mxu1 }
  0xce   :  { %v2154_v19 = vpop.f32.mrf.mxu0 }
  0xcf   :  { %v2156_v1 = vpop.f32.mrf.mxu1 }
  0xd0   :  { %v2158_v20 = vpop.f32.mrf.mxu0 }
  0xd1   :  { %v2160_v21 = vpop.f32.mrf.mxu1 }
  0xd2   :  { %v2162_v22 = vpop.f32.mrf.mxu0 }
  0xd3   :  { %v2164_v23 = vpop.f32.mrf.mxu1 }
  0xd4   :  { %v2166_v24 = vpop.f32.mrf.mxu0 }
  0xd5   :  { %v2168_v9 = vpop.f32.mrf.mxu1 }
  0xd6   :  { %v2170_v25 = vpop.f32.mrf.mxu0 }
  0xd7   :  { %v2172_v26 = vpop.f32.mrf.mxu1 }
  0xd8   :  { %v2174_v27 = vpop.f32.mrf.mxu0 }
  0xd9   :  { %v2176_v28 = vpop.f32.mrf.mxu1 }
  0xda   :  { %v2178_v29 = vpop.f32.mrf.mxu0 }
  0xdb   :  { %v498_v30 = vpop.f32.mrf.mxu1 }
  0xdc   :  { %v1692_v31 = vpop.f32.mrf.mxu0  ;;  %v677_v4 = vmax.f32 %v172_v15, %v498_v30 }
  0xdd   :  { %v500_v32 = vpop.f32.mrf.mxu1 }
  0xde   :  { %v2180_v33 = vpop.f32.mrf.mxu0  ;;  %v678_v8 = vmax.f32 %v174_v17, %v500_v32 }
  0xdf   :  { %v502_v34 = vpop.f32.mrf.mxu1 }
  0xe0   :  { %v1693_v35 = vpop.f32.mrf.mxu0  ;;  %v686_v13 = vmax.f32 %v2154_v19, %v502_v34  ;;  %v2237_v19 = vpop.permute.xlu0 %1392 }
  0xe1   :  { %v504_v36 = vpop.f32.mrf.mxu1 }
  0xe2   :  { %v2182_v37 = vpop.f32.mrf.mxu0  ;;  %v687_v35 = vmax.f32 %v2158_v20, %v504_v36 }
  0xe3   :  { %v2184_v38 = vpop.f32.mrf.mxu1  ;;  %v679_v15 = vmax.f32 %v2150_v16, %v2182_v37 }
  0xe4   :  { %v2186_v39 = vpop.f32.mrf.mxu0  ;;  %v681_v30 = vmax.f32 %v2162_v22, %v2184_v38 }
  0xe5   :  { %v2188_v40 = vpop.f32.mrf.mxu1  ;;  %v680_v17 = vmax.f32 %v2152_v18, %v2186_v39 }
  0xe6   :  { %v2190_v41 = vpop.f32.mrf.mxu0  ;;  %v682_v20 = vmax.f32 %v2166_v24, %v2188_v40 }
  0xe7   :  { %v2192_v42 = vpop.f32.mrf.mxu1  ;;  %v688_v16 = vmax.f32 %v2156_v1, %v2190_v41 }
  0xe8   :  { %v2194_v43 = vpop.f32.mrf.mxu0  ;;  %v690_v22 = vmax.f32 %v2170_v25, %v2192_v42 }
  0xe9   :  { %v2196_v44 = vpop.f32.mrf.mxu1  ;;  %v689_v34 = vmax.f32 %v2160_v21, %v2194_v43 }
  0xea   :  { %v2198_v45 = vpop.f32.mrf.mxu0  ;;  %v691_v37 = vmax.f32 %v2174_v27, %v2196_v44 }
  0xeb   :  { %v2200_v46 = vpop.f32.mrf.mxu1  ;;  %v683_v24 = vmax.f32 %v2164_v23, %v2198_v45 }
  0xec   :  { %v2202_v47 = vpop.f32.mrf.mxu0  ;;  %v685_v1 = vmax.f32 %v2178_v29, %v2200_v46 }
  0xed   :  { %v1700_v48 = vpop.f32.mrf.mxu1  ;;  %v684_v25 = vmax.f32 %v2168_v9, %v2202_v47 }
  0xee   :  { %v2204_v49 = vpop.f32.mrf.mxu0 }
  0xef   :  { %v2206_v50 = vpop.f32.mrf.mxu1  ;;  %v692_v44 = vmax.f32 %v2172_v26, %v2204_v49 }
  0xf0   :  { %v2208_v51 = vpop.f32.mrf.mxu0  ;;  %v694_v23 = vmax.f32 %v2180_v33, %v2206_v50 }
  0xf1   :  { %v1701_v52 = vpop.f32.mrf.mxu1 }
  0xf2   :  { %v842_v53 = vpop.f32.mrf.mxu0 }
  0xf3   :  { %v885_v54 = vpop.f32.mrf.mxu1  ;;  %v1021_v10 = vmax.f32 %v677_v4, %v842_v53 }
  0xf4   :  { %v844_v55 = vpop.f32.mrf.mxu0  ;;  %v1023_v21 = vmax.f32 %v679_v15, %v885_v54 }
  0xf5   :  { %v887_v56 = vpop.f32.mrf.mxu1  ;;  %v1022_v14 = vmax.f32 %v678_v8, %v844_v55 }
  0xf6   :  { %v846_v57 = vpop.f32.mrf.mxu0  ;;  %v1024_v45 = vmax.f32 %v680_v17, %v887_v56 }
  0xf7   :  { %v889_v58 = vpop.f32.mrf.mxu1  ;;  %v1030_v32 = vmax.f32 %v686_v13, %v846_v57 }
  0xf8   :  { %v848_v59 = vpop.f32.mrf.mxu0 }
  0xf9   :  { %v2210_v60 = vpop.f32.mrf.mxu1  ;;  %v1031_v38 = vmax.f32 %v687_v35, %v848_v59 }
  0xfa   :  { %v928_v61 = vpop.f32.mrf.mxu0  ;;  %v1033_v35 = vmax.f32 %v689_v34, %v2210_v60 }
  0xfb   :  { %v2212_v62 = vpop.f32.mrf.mxu1  ;;  %v1025_v59 = vmax.f32 %v681_v30, %v928_v61 }
  0xfc   :  { %v930_v63 = vpop.f32.mrf.mxu0  ;;  %v1027_v15 = vmax.f32 %v683_v24, %v2212_v62 }
  0xfd   :  { %v2214_v0 = vpop.f32.mrf.mxu1  ;;  %v1026_v8 = vmax.f32 %v682_v20, %v930_v63 }
  0xfe   :  { %v2216_v2 = vpop.f32.mrf.mxu0 }
  0xff   :  { %v2218_v3 = vpop.f32.mrf.mxu1 }
 0x100   :  { %v2222_v6 = vpop.f32.mrf.mxu0 }
 0x101   :  { %v2224_v7 = vpop.f32.mrf.mxu1 }
 0x102   :  { %v2226_v11 = vpop.f32.mrf.mxu0 }
 0x103   :  { %v1186_v12 = vpop.f32.mrf.mxu1 }
 0x104   :  { %v1365_v31 = vmax.f32 %v1021_v10, %v1186_v12  ;;  %v1708_v48 = vpop.f32.mrf.mxu0  ;;  %v693_v10 = vmax.f32 %v2176_v28, %v2208_v51  ;;  %v1032_v12 = vmax.f32 %v688_v16, %v889_v58  ;;  %v1034_v28 = vmax.f32 %v690_v22, %v2216_v2 }
 0x105   :  { %v1188_v52 = vpop.f32.mrf.mxu1  ;;  %v1035_v48 = vmax.f32 %v691_v37, %v2222_v6  ;;  %v1028_v6 = vmax.f32 %v684_v25, %v2214_v0  ;;  %v1029_v37 = vmax.f32 %v685_v1, %v2226_v11 }
 0x106   :  { %v1366_v53 = vmax.f32 %v1022_v14, %v1188_v52  ;;  %v1395_v4 = vadd.f32 %v2220_v5, %v1365_v31  ;;  %v2247_v36 = vpop.f32.mrf.mxu0 }
 0x107   :  { %v1190_v18 = vpop.f32.mrf.mxu1 }
 0x108   :  { %v1396_v39 = vadd.f32 %v2220_v5, %v1366_v53  ;;  %v1374_v55 = vmax.f32 %v1030_v32, %v1190_v18  ;;  %v1709_v40 = vpop.f32.mrf.mxu0  ;;  %v1413_v42 = vmax.f32 %v1395_v4, 0.0 }
 0x109   :  { %v1192_v41 = vpop.f32.mrf.mxu1 }
 0x10a   :  { %v1414_v43 = vmax.f32 %v1396_v39, 0.0  ;;  %v1375_v57 = vmax.f32 %v1031_v38, %v1192_v41  ;;  %v1404_v27 = vadd.f32 %v2237_v19, %v1374_v55  ;;  %v1229_v29 = vpop.f32.mrf.mxu0 }
 0x10b   :  { %v1272_v46 = vpop.f32.mrf.mxu1  ;;  %v1367_v54 = vmax.f32 %v1023_v21, %v1229_v29 }
 0x10c   :  { %v1664_v9 = vpack.c.bf16 %v1414_v43, %v1413_v42  ;;  %v1405_v47 = vadd.f32 %v2237_v19, %v1375_v57  ;;  %v1422_v13 = vmax.f32 %v1404_v27, 0.0  ;;  %v1369_v14 = vmax.f32 %v1025_v59, %v1272_v46  ;;  %v1231_v31 = vpop.f32.mrf.mxu0 }
 0x10d   :  { %v1274_v26 = vpop.f32.mrf.mxu1  ;;  %v1397_v56 = vadd.f32 %v2220_v5, %v1367_v54  ;;  %v1368_v61 = vmax.f32 %v1024_v45, %v1231_v31  ;;  %v1036_v43 = vmax.f32 %v692_v44, %v2218_v3  ;;  %v1037_v46 = vmax.f32 %v693_v10, %v2224_v7 }
 0x10e   :  { %1487 = vst [vmem:[%s2325_s3] sm:$0xff] %v1664_v9  ;;  %v1423_v49 = vmax.f32 %v1405_v47, 0.0  ;;  %v1370_v63 = vmax.f32 %v1026_v8, %v1274_v26  ;;  %v1399_v51 = vadd.f32 %v2220_v5, %v1369_v14  ;;  %v1233_v58 = vpop.f32.mrf.mxu0  ;;  %v1038_v3 = vmax.f32 %v694_v23, %v2247_v36 }
 0x10f   :  { %v1276_v30 = vpop.f32.mrf.mxu1  ;;  %v1398_v17 = vadd.f32 %v2220_v5, %v1368_v61  ;;  %v1415_v53 = vmax.f32 %v1397_v56, 0.0  ;;  %v1376_v20 = vmax.f32 %v1032_v12, %v1233_v58 }
 0x110   :  { %v1669_v52 = vpack.c.bf16 %v1423_v49, %v1422_v13  ;;  %v1400_v32 = vadd.f32 %v2220_v5, %v1370_v63  ;;  %v1417_v4 = vmax.f32 %v1399_v51, 0.0  ;;  %v1378_v16 = vmax.f32 %v1034_v28, %v1276_v30  ;;  %v1235_v60 = vpop.f32.mrf.mxu0 }
 0x111   :  { %v1278_v34 = vpop.f32.mrf.mxu1  ;;  %v1416_v62 = vmax.f32 %v1398_v17, 0.0  ;;  %v1377_v22 = vmax.f32 %v1033_v35, %v1235_v60  ;;  %v1406_v38 = vadd.f32 %v2237_v19, %v1376_v20 }
 0x112   :  { %1492 = vst [vmem:[%s2325_s3 + $0x24] sm:$0xff] %v1669_v52  ;;  %v1418_v2 = vmax.f32 %v1400_v32, 0.0  ;;  %v1379_v18 = vmax.f32 %v1035_v48, %v1278_v34  ;;  %v1408_v39 = vadd.f32 %v2237_v19, %v1378_v16  ;;  %v1315_v55 = vpop.f32.mrf.mxu0 }
 0x113   :  { %v1358_v24 = vpop.f32.mrf.mxu1  ;;  %v1665_v21 = vpack.c.bf16 %v1416_v62, %v1415_v53  ;;  %v1407_v41 = vadd.f32 %v2237_v19, %v1377_v22  ;;  %v1424_v57 = vmax.f32 %v1406_v38, 0.0  ;;  %v1371_v27 = vmax.f32 %v1027_v15, %v1315_v55 }
 0x114   :  { %v1666_v40 = vpack.c.bf16 %v1418_v2, %v1417_v4  ;;  %v1409_v42 = vadd.f32 %v2237_v19, %v1379_v18  ;;  %v1373_v45 = vmax.f32 %v1029_v37, %v1358_v24  ;;  %v1317_v0 = vpop.f32.mrf.mxu0  ;;  %v1426_v11 = vmax.f32 %v1408_v39, 0.0 }
 0x115   :  { %v1716_v25 = vpop.f32.mrf.mxu1  ;;  %1488 = vst [vmem:[%s2325_s3 + $0x8] sm:$0xff] %v1665_v21  ;;  %v1425_v1 = vmax.f32 %v1407_v41, 0.0  ;;  %v1372_v29 = vmax.f32 %v1028_v6, %v1317_v0  ;;  %v1401_v44 = vadd.f32 %v2220_v5, %v1371_v27 }
 0x116   :  { %1489 = vst [vmem:[%s2325_s3 + $0x10] sm:$0xff] %v1666_v40  ;;  %v1427_v59 = vmax.f32 %v1409_v42, 0.0  ;;  %v1403_v8 = vadd.f32 %v2220_v5, %v1373_v45  ;;  %v1319_v9 = vpop.f32.mrf.mxu0 }
 0x117   :  { %v1361_v47 = vpop.f32.mrf.mxu1  ;;  %v1670_v54 = vpack.c.bf16 %v1425_v1, %v1424_v57  ;;  %v1402_v13 = vadd.f32 %v2220_v5, %v1372_v29  ;;  %v1380_v14 = vmax.f32 %v1036_v43, %v1319_v9  ;;  %v1419_v33 = vmax.f32 %v1401_v44, 0.0 }
 0x118   :  { %v1671_v12 = vpack.c.bf16 %v1427_v59, %v1426_v11  ;;  %v1421_v31 = vmax.f32 %v1403_v8, 0.0  ;;  %v1382_v26 = vmax.f32 %v1038_v3, %v1361_v47  ;;  %v1321_v49 = vpop.f32.mrf.mxu0 }
 0x119   :  { %v1717_v7 = vpop.f32.mrf.mxu1  ;;  %1493 = vst [vmem:[%s2325_s3 + $0x2c] sm:$0xff] %v1670_v54  ;;  %v1420_v50 = vmax.f32 %v1402_v13, 0.0  ;;  %v1410_v36 = vadd.f32 %v2237_v19, %v1380_v14  ;;  %v1381_v23 = vmax.f32 %v1037_v46, %v1321_v49 }
 0x11a   :  { %1494 = vst [vmem:[%s2325_s3 + $0x34] sm:$0xff] %v1671_v12  ;;  %v1668_v10 = vpack.c.bf16 %v1421_v31, %v1421_v31  ;;  %v1412_v5 = vadd.f32 %v2237_v19, %v1382_v26 }
 0x11b   :  { %v1667_v56 = vpack.c.bf16 %v1420_v50, %v1419_v33  ;;  %v1411_v61 = vadd.f32 %v2237_v19, %v1381_v23  ;;  %v1428_v35 = vmax.f32 %v1410_v36, 0.0 }
 0x11c   :  { %1491 = vst [vmem:[%s2325_s3 + $0x20] sm:$0xf] %v1668_v10  ;;  %v1430_v63 = vmax.f32 %v1412_v5, 0.0 }
 0x11d   :  { %1490 = vst [vmem:[%s2325_s3 + $0x18] sm:$0xff] %v1667_v56  ;;  %v1429_v15 = vmax.f32 %v1411_v61, 0.0 }
 0x11e   :  { %v1673_v28 = vpack.c.bf16 %v1430_v63, %v1430_v63 }
 0x11f   :  { %v1672_v51 = vpack.c.bf16 %v1429_v15, %v1428_v35 }
 0x120   :  { %1496 = vst [vmem:[%s2325_s3 + $0x44] sm:$0xf] %v1673_v28 }
 0x121   :  { %1495 = vst [vmem:[%s2325_s3 + $0x3c] sm:$0xff] %v1672_v51 }

// kernel: _lambda_.4
= control target key start
LH: loop header
LB: loop body
LE: loop exit
PB: predicated region body
PF: predicated region fallthrough
CT: control target
= control target key end

     0   :  { %v1186_v1 = vmov 0   ;;  %s1435_s0 = inlined_call_operand.vmem [shape: bf16[4,256,128], index: 0, kind: input, shape index: {}]   ;;  %s1436_s1 = inlined_call_operand.vmem [shape: bf16[32,256], index: 1, kind: input, shape index: {}]   ;;  %s1437_s2 = inlined_call_operand.vmem [shape: f32[32,1], index: 2, kind: input, shape index: {}]   ;;  %s1438_s3 = inlined_call_operand.vmem [shape: bf16[32,128], index: 3, kind: output, shape index: {}]  }
   0x1   :  { %v1116_v0 = vld [vmem:[%s1435_s0 + $0x78] sm:$0xff]   ;;  %1114 = vset.pattern.permute.xlu0 %v1186_v1  ;;  %1115 = vset.pattern.permute.xlu1 %v1186_v1  ;;  %v1120_v5 = vld [vmem:[%s1435_s0 + $0x70] sm:$0xff]   ;;  %v1124_v9 = vld [vmem:[%s1435_s0 + $0x68] sm:$0xff]  }
   0x2   :  { %v1117_v2 = vld [vmem:[%s1435_s0 + $0xf8] sm:$0xff]   ;;  %1001 = vmatprep.subr.bf16.mxu0 %v1116_v0  ;;  %v1121_v6 = vld [vmem:[%s1435_s0 + $0xf0] sm:$0xff]   ;;  %v1125_v10 = vld [vmem:[%s1435_s0 + $0xe8] sm:$0xff]  }
   0x3   :  { %v1118_v3 = vld [vmem:[%s1435_s0 + $0x38] sm:$0xff]   ;;  %1029 = vmatprep.subr.bf16.mxu1 %v1117_v2  ;;  %v1122_v7 = vld [vmem:[%s1435_s0 + $0x30] sm:$0xff]   ;;  %v1126_v11 = vld [vmem:[%s1435_s0 + $0x28] sm:$0xff]  }
   0x4   :  { %v1119_v4 = vld [vmem:[%s1435_s0 + $0xb8] sm:$0xff]   ;;  %1002 = vmatpush3.bf16.msra.mxu0 %v1118_v3  ;;  %v1123_v8 = vld [vmem:[%s1435_s0 + $0xb0] sm:$0xff]   ;;  %v1127_v12 = vld [vmem:[%s1435_s0 + $0xa8] sm:$0xff]  }
   0x5   :  { %1030 = vmatpush3.bf16.msra.mxu1 %v1119_v4  ;;  %1003 = vmatprep.subr.bf16.mxu0 %v1120_v5  ;;  %v1128_v13 = vld [vmem:[%s1435_s0 + $0x60] sm:$0xff]   ;;  %v1132_v17 = vld [vmem:[%s1435_s0 + $0x58] sm:$0xff]   ;;  %v1136_v21 = vld [vmem:[%s1435_s0 + $0x50] sm:$0xff]  }
   0x6   :  { %1031 = vmatprep.subr.bf16.mxu1 %v1121_v6  ;;  %v1129_v14 = vld [vmem:[%s1435_s0 + $0xe0] sm:$0xff]   ;;  %v1133_v18 = vld [vmem:[%s1435_s0 + $0xd8] sm:$0xff]   ;;  %v1137_v22 = vld [vmem:[%s1435_s0 + $0xd0] sm:$0xff]  }
   0x7   :  { %v1130_v15 = vld [vmem:[%s1435_s0 + $0x20] sm:$0xff]   ;;  %v1134_v19 = vld [vmem:[%s1435_s0 + $0x18] sm:$0xff]   ;;  %v1138_v23 = vld [vmem:[%s1435_s0 + $0x10] sm:$0xff]  }
   0x8   :  { %1004 = vmatpush3.bf16.msra.mxu0 %v1122_v7  ;;  %v1131_v16 = vld [vmem:[%s1435_s0 + $0xa0] sm:$0xff]   ;;  %v1135_v20 = vld [vmem:[%s1435_s0 + $0x98] sm:$0xff]   ;;  %v1139_v24 = vld [vmem:[%s1435_s0 + $0x90] sm:$0xff]  }
   0x9   :  { %1032 = vmatpush3.bf16.msra.mxu1 %v1123_v8  ;;  %1005 = vmatprep.subr.bf16.mxu0 %v1124_v9  ;;  %v1140_v25 = vld [vmem:[%s1435_s0 + $0x48] sm:$0xff]   ;;  %v1144_v29 = vld [vmem:[%s1435_s0 + $0x40] sm:$0xff]   ;;  %v1151_v35 = vld [vmem:[%s1435_s0 + $0x178] sm:$0xff]  }
   0xa   :  { %1033 = vmatprep.subr.bf16.mxu1 %v1125_v10  ;;  %v1141_v26 = vld [vmem:[%s1435_s0 + $0xc8] sm:$0xff]   ;;  %v1145_v30 = vld [vmem:[%s1435_s0 + $0xc0] sm:$0xff]   ;;  %v1152_v36 = vld [vmem:[%s1435_s0 + $0x1f8] sm:$0xff]  }
   0xb   :  { %v1142_v27 = vld [vmem:[%s1435_s0 + $0x8] sm:$0xff]   ;;  %v1146_v31 = vld [vmem:[%s1435_s0] sm:$0xff]   ;;  %v1153_v37 = vld [vmem:[%s1435_s0 + $0x138] sm:$0xff]  }
   0xc   :  { %1006 = vmatpush3.bf16.msra.mxu0 %v1126_v11  ;;  %v1143_v28 = vld [vmem:[%s1435_s0 + $0x88] sm:$0xff]   ;;  %v1147_v32 = vld [vmem:[%s1435_s0 + $0x80] sm:$0xff]   ;;  %v1154_v38 = vld [vmem:[%s1435_s0 + $0x1b8] sm:$0xff]  }
   0xd   :  { %1034 = vmatpush3.bf16.msra.mxu1 %v1127_v12  ;;  %1007 = vmatprep.subr.bf16.mxu0 %v1128_v13  ;;  %v1148_v33 = vld [vmem:[%s1436_s1 + $0x4] ss:$8 sps:$4 sm:$0xff]   ;;  %v1309_v34 = vld [vmem:[%s1436_s1] ss:$8 sps:$4 sm:$0xff]   ;;  %v1155_v39 = vld [vmem:[%s1435_s0 + $0x170] sm:$0xff]  }
   0xe   :  { %1035 = vmatprep.subr.bf16.mxu1 %v1129_v14  ;;  %199 = vmatprep.mubr.bf16.mxu0 %v1148_v33  ;;  %v1156_v40 = vld [vmem:[%s1435_s0 + $0x1f0] sm:$0xff]   ;;  %v1159_v43 = vld [vmem:[%s1435_s0 + $0x168] sm:$0xff]   ;;  %v1163_v47 = vld [vmem:[%s1435_s0 + $0x160] sm:$0xff]  }
   0xf   :  { %377 = vmatprep.mubr.bf16.mxu1 %v1148_v33  ;;  %v1157_v41 = vld [vmem:[%s1435_s0 + $0x130] sm:$0xff]   ;;  %v1160_v44 = vld [vmem:[%s1435_s0 + $0x1e8] sm:$0xff]   ;;  %v1164_v48 = vld [vmem:[%s1435_s0 + $0x1e0] sm:$0xff]  }
  0x10   :  { %1008 = vmatpush3.bf16.msra.mxu0 %v1130_v15  ;;  %v1158_v42 = vld [vmem:[%s1435_s0 + $0x1b0] sm:$0xff]   ;;  %v1161_v45 = vld [vmem:[%s1435_s0 + $0x128] sm:$0xff]   ;;  %v1165_v49 = vld [vmem:[%s1435_s0 + $0x120] sm:$0xff]  }
  0x11   :  { %1036 = vmatpush3.bf16.msra.mxu1 %v1131_v16  ;;  %1009 = vmatprep.subr.bf16.mxu0 %v1132_v17  ;;  %v1162_v46 = vld [vmem:[%s1435_s0 + $0x1a8] sm:$0xff]   ;;  %v1166_v50 = vld [vmem:[%s1435_s0 + $0x1a0] sm:$0xff]   ;;  %v1167_v51 = vld [vmem:[%s1435_s0 + $0x158] sm:$0xff]  }
  0x12   :  { %1037 = vmatprep.subr.bf16.mxu1 %v1133_v18  ;;  %v1168_v52 = vld [vmem:[%s1435_s0 + $0x1d8] sm:$0xff]   ;;  %v1174_v57 = vld [vmem:[%s1435_s0 + $0x150] sm:$0xff]   ;;  %v1178_v61 = vld [vmem:[%s1435_s0 + $0x148] sm:$0xff]  }
  0x13   :  { %v1169_v53 = vld [vmem:[%s1436_s1 + $0x14] ss:$8 sps:$4 sm:$0xff]   ;;  %v1173_v56 = vld [vmem:[%s1436_s1 + $0x10] ss:$8 sps:$4 sm:$0xff]   ;;  %v1179_v62 = vld [vmem:[%s1435_s0 + $0x1c8] sm:$0xff]  }
  0x14   :  { %1010 = vmatpush3.bf16.msra.mxu0 %v1134_v19  ;;  %v1171_v54 = vld [vmem:[%s1435_s0 + $0x118] sm:$0xff]   ;;  %v1175_v58 = vld [vmem:[%s1435_s0 + $0x1d0] sm:$0xff]   ;;  %v1180_v63 = vld [vmem:[%s1435_s0 + $0x108] sm:$0xff]  }
  0x15   :  { %1038 = vmatpush3.bf16.msra.mxu1 %v1135_v20  ;;  %1011 = vmatprep.subr.bf16.mxu0 %v1136_v21  ;;  %v1172_v55 = vld [vmem:[%s1435_s0 + $0x198] sm:$0xff]   ;;  %v1176_v59 = vld [vmem:[%s1435_s0 + $0x110] sm:$0xff]   ;;  %v1181_v0 = vld [vmem:[%s1435_s0 + $0x188] sm:$0xff]  }
  0x16   :  { %1039 = vmatprep.subr.bf16.mxu1 %v1137_v22  ;;  %v1177_v60 = vld [vmem:[%s1435_s0 + $0x190] sm:$0xff]   ;;  %v1182_v1 = vld [vmem:[%s1435_s0 + $0x140] sm:$0xff]   ;;  %v763_v7 = vld [vmem:[%s1437_s2 + $0x8] sm:$0xff] }
  0x17   :  { %v1183_v2 = vld [vmem:[%s1435_s0 + $0x1c0] sm:$0xff]   ;;  %v764_v6 = vld [vmem:[%s1437_s2 + $0x10] sm:$0xff]  ;;  %v765_v8 = vld [vmem:[%s1437_s2 + $0x18] sm:$0xff] }
  0x18   :  { %1012 = vmatpush3.bf16.msra.mxu0 %v1138_v23  ;;  %v1184_v3 = vld [vmem:[%s1435_s0 + $0x100] sm:$0xff]   ;;  %778 = vperm.xlu1 %1115, %v764_v6  }
  0x19   :  { %1040 = vmatpush3.bf16.msra.mxu1 %v1139_v24  ;;  %1013 = vmatprep.subr.bf16.mxu0 %v1140_v25  ;;  %v1185_v4 = vld [vmem:[%s1435_s0 + $0x180] sm:$0xff]  }
  0x1a   :  { %1041 = vmatprep.subr.bf16.mxu1 %v1141_v26  ;;  %v762_v5 = vld [vmem:[%s1437_s2] sm:$0xff] }
  0x1b   :  { %768 = vperm.xlu0 %1114, %v762_v5  }
  0x1c   :  { %1014 = vmatpush3.bf16.msra.mxu0 %v1142_v27  ;;  %783 = vperm.xlu1 %1115, %v765_v8  }
  0x1d   :  { %1042 = vmatpush3.bf16.msra.mxu1 %v1143_v28  ;;  %1015 = vmatprep.subr.bf16.mxu0 %v1144_v29 }
  0x1e   :  { %1043 = vmatprep.subr.bf16.mxu1 %v1145_v30 }
  0x1f   :  { %773 = vperm.xlu0 %1114, %v763_v7  }
  0x20   :  { %1016 = vmatpush3.bf16.msra.mxu0 %v1146_v31 }
  0x21   :  { %1044 = vmatpush3.bf16.msra.mxu1 %v1147_v32  ;;  %1057 = vmatprep.subr.bf16.mxu0 %v1151_v35 }
  0x22   :  { %1085 = vmatprep.subr.bf16.mxu1 %v1152_v36 }
  0x23   :  { %200 = vmatmul.mubr.bf16.vlgmr.msra.gmra.mxu0 %v1309_v34 }
  0x24   :  { %378 = vmatmul.mubr.bf16.vlgmr.msra.gmra.mxu1 %v1309_v34  ;;  %1058 = vmatpush3.bf16.msra.mxu0 %v1153_v37 }
  0x25   :  { %1086 = vmatpush3.bf16.msra.mxu1 %v1154_v38  ;;  %1059 = vmatprep.subr.bf16.mxu0 %v1155_v39 }
  0x26   :  { %1087 = vmatprep.subr.bf16.mxu1 %v1156_v40  ;;  %207 = vmatprep.mubr.bf16.mxu0 %v1169_v53 }
  0x27   :  { %385 = vmatprep.mubr.bf16.mxu1 %v1169_v53 }
  0x28   :  { %1060 = vmatpush3.bf16.msra.mxu0 %v1157_v41 }
  0x29   :  { %1088 = vmatpush3.bf16.msra.mxu1 %v1158_v42  ;;  %1061 = vmatprep.subr.bf16.mxu0 %v1159_v43 }
  0x2a   :  { %1089 = vmatprep.subr.bf16.mxu1 %v1160_v44 }
  0x2b   :  { %208 = vmatmul.mubr.bf16.gmra.mxu0 %v1173_v56 }
  0x2c   :  { %1062 = vmatpush3.bf16.msra.mxu0 %v1161_v45  ;;  %386 = vmatmul.mubr.bf16.gmra.mxu1 %v1173_v56 }
  0x2d   :  { %1090 = vmatpush3.bf16.msra.mxu1 %v1162_v46  ;;  %1063 = vmatprep.subr.bf16.mxu0 %v1163_v47 }
  0x2e   :  { %1091 = vmatprep.subr.bf16.mxu1 %v1164_v48  ;;  %559 = vmatprep.mubr.bf16.mxu0 %v1148_v33 }
  0x2f   :  { %741 = vmatprep.mubr.bf16.mxu1 %v1148_v33 }
  0x30   :  { %1064 = vmatpush3.bf16.msra.mxu0 %v1165_v49 }
  0x31   :  { %1092 = vmatpush3.bf16.msra.mxu1 %v1166_v50  ;;  %1065 = vmatprep.subr.bf16.mxu0 %v1167_v51 }
  0x32   :  { %1093 = vmatprep.subr.bf16.mxu1 %v1168_v52 }
  0x34   :  { %1066 = vmatpush3.bf16.msra.mxu0 %v1171_v54 }
  0x35   :  { %1094 = vmatpush3.bf16.msra.mxu1 %v1172_v55  ;;  %1067 = vmatprep.subr.bf16.mxu0 %v1174_v57 }
  0x36   :  { %1095 = vmatprep.subr.bf16.mxu1 %v1175_v58 }
  0x38   :  { %1068 = vmatpush3.bf16.msra.mxu0 %v1176_v59 }
  0x39   :  { %1096 = vmatpush3.bf16.msra.mxu1 %v1177_v60  ;;  %1069 = vmatprep.subr.bf16.mxu0 %v1178_v61 }
  0x3a   :  { %1097 = vmatprep.subr.bf16.mxu1 %v1179_v62 }
  0x3c   :  { %1070 = vmatpush3.bf16.msra.mxu0 %v1180_v63 }
  0x3d   :  { %1098 = vmatpush3.bf16.msra.mxu1 %v1181_v0  ;;  %1071 = vmatprep.subr.bf16.mxu0 %v1182_v1 }
  0x3e   :  { %1099 = vmatprep.subr.bf16.mxu1 %v1183_v2 }
  0x40   :  { %1072 = vmatpush3.bf16.msra.mxu0 %v1184_v3 }
  0x41   :  { %1100 = vmatpush3.bf16.msra.mxu1 %v1185_v4 }
  0x43   :  { %560 = vmatmul.mubr.bf16.vlgmr.msra.gmra.mxu0 %v1309_v34 }
  0x44   :  { %742 = vmatmul.mubr.bf16.vlgmr.msra.gmra.mxu1 %v1309_v34  ;;  %567 = vmatprep.mubr.bf16.mxu0 %v1169_v53 }
  0x45   :  { %749 = vmatprep.mubr.bf16.mxu1 %v1169_v53 }
  0x4b   :  { %568 = vmatmul.mubr.bf16.gmra.mxu0 %v1173_v56 }
  0x4c   :  { %750 = vmatmul.mubr.bf16.gmra.mxu1 %v1173_v56 }
  0x93   :  { %v779_v2 = vpop.permute.xlu1 %778 }
  0x96   :  { %v769_v36 = vpop.permute.xlu0 %768 }
  0x9a   :  { %v774_v54 = vpop.permute.xlu0 %773 }
  0xe3   :  { %v1017_v9 = vpop.f32.mrf.mxu0 }
  0xe4   :  { %v1045_v10 = vpop.f32.mrf.mxu1 }
  0xe5   :  { %v1018_v11 = vpop.f32.mrf.mxu0 }
  0xe6   :  { %v1046_v12 = vpop.f32.mrf.mxu1  ;;  %v1019_v24 = vadd.f32 %v1018_v11, %v1017_v9 }
  0xe7   :  { %v1020_v13 = vpop.f32.mrf.mxu0  ;;  %v1047_v25 = vadd.f32 %v1046_v12, %v1045_v10 }
  0xe8   :  { %v1048_v14 = vpop.f32.mrf.mxu1 }
  0xe9   :  { %v1021_v15 = vpop.f32.mrf.mxu0  ;;  %v394_v32 = vmax.f32 %v1019_v24, %v1047_v25 }
  0xea   :  { %v1049_v16 = vpop.f32.mrf.mxu1  ;;  %v1022_v29 = vadd.f32 %v1021_v15, %v1020_v13 }
  0xeb   :  { %v1023_v17 = vpop.f32.mrf.mxu0  ;;  %v1050_v30 = vadd.f32 %v1049_v16, %v1048_v14  ;;  %v784_v14 = vpop.permute.xlu1 %783 }
  0xec   :  { %v1051_v18 = vpop.f32.mrf.mxu1 }
  0xed   :  { %v1024_v19 = vpop.f32.mrf.mxu0  ;;  %v395_v40 = vmax.f32 %v1022_v29, %v1050_v30 }
  0xee   :  { %v1052_v20 = vpop.f32.mrf.mxu1  ;;  %v1025_v42 = vadd.f32 %v1024_v19, %v1023_v17 }
  0xef   :  { %v1026_v21 = vpop.f32.mrf.mxu0  ;;  %v1053_v43 = vadd.f32 %v1052_v20, %v1051_v18 }
  0xf0   :  { %v1054_v22 = vpop.f32.mrf.mxu1 }
  0xf1   :  { %v1027_v23 = vpop.f32.mrf.mxu0  ;;  %v396_v55 = vmax.f32 %v1025_v42, %v1053_v43 }
  0xf2   :  { %v1055_v26 = vpop.f32.mrf.mxu1  ;;  %v1028_v51 = vadd.f32 %v1027_v23, %v1026_v21 }
  0xf3   :  { %v1056_v52 = vadd.f32 %v1055_v26, %v1054_v22 }
  0xf5   :  { %v397_v1 = vmax.f32 %v1028_v51, %v1056_v52 }
 0x103   :  { %v1073_v27 = vpop.f32.mrf.mxu0 }
 0x104   :  { %v1101_v28 = vpop.f32.mrf.mxu1 }
 0x105   :  { %v1074_v31 = vpop.f32.mrf.mxu0 }
 0x106   :  { %v1075_v33 = vadd.f32 %v1074_v31, %v1073_v27  ;;  %v1102_v34 = vpop.f32.mrf.mxu1 }
 0x107   :  { %v1076_v35 = vpop.f32.mrf.mxu0  ;;  %v1103_v38 = vadd.f32 %v1102_v34, %v1101_v28 }
 0x108   :  { %v576_v37 = vmax.f32 %v394_v32, %v1075_v33  ;;  %v1104_v39 = vpop.f32.mrf.mxu1 }
 0x109   :  { %v1077_v41 = vpop.f32.mrf.mxu0 }
 0x10a   :  { %v1078_v44 = vadd.f32 %v1077_v41, %v1076_v35  ;;  %v1105_v45 = vpop.f32.mrf.mxu1  ;;  %v758_v46 = vmax.f32 %v576_v37, %v1103_v38 }
 0x10b   :  { %v1079_v47 = vpop.f32.mrf.mxu0  ;;  %v1106_v49 = vadd.f32 %v1105_v45, %v1104_v39 }
 0x10c   :  { %v577_v48 = vmax.f32 %v395_v40, %v1078_v44  ;;  %v1107_v50 = vpop.f32.mrf.mxu1  ;;  %v786_v56 = vadd.f32 %v769_v36, %v758_v46 }
 0x10d   :  { %v1080_v53 = vpop.f32.mrf.mxu0 }
 0x10e   :  { %v1081_v57 = vadd.f32 %v1080_v53, %v1079_v47  ;;  %v1108_v58 = vpop.f32.mrf.mxu1  ;;  %v759_v59 = vmax.f32 %v577_v48, %v1106_v49  ;;  %v790_v4 = vmax.f32 %v786_v56, 0.0 }
 0x10f   :  { %v1082_v60 = vpop.f32.mrf.mxu0  ;;  %v1109_v62 = vadd.f32 %v1108_v58, %v1107_v50 }
 0x110   :  { %v578_v61 = vmax.f32 %v396_v55, %v1081_v57  ;;  %v787_v63 = vadd.f32 %v774_v54, %v759_v59  ;;  %v1110_v0 = vpop.f32.mrf.mxu1 }
 0x111   :  { %v1083_v3 = vpop.f32.mrf.mxu0 }
 0x112   :  { %v760_v5 = vmax.f32 %v578_v61, %v1109_v62  ;;  %v791_v6 = vmax.f32 %v787_v63, 0.0  ;;  %v1084_v7 = vadd.f32 %v1083_v3, %v1082_v60  ;;  %v1111_v8 = vpop.f32.mrf.mxu1 }
 0x113   :  { %v1112_v11 = vadd.f32 %v1111_v8, %v1110_v0 }
 0x114   :  { %v993_v9 = vpack.c.bf16 %v791_v6, %v790_v4  ;;  %v579_v10 = vmax.f32 %v397_v1, %v1084_v7  ;;  %v788_v12 = vadd.f32 %v779_v2, %v760_v5 }
 0x116   :  { %994 = vst [vmem:[%s1438_s3] sm:$0xff] %v993_v9   ;;  %v761_v13 = vmax.f32 %v579_v10, %v1112_v11  ;;  %v792_v16 = vmax.f32 %v788_v12, 0.0 }
 0x118   :  { %v789_v15 = vadd.f32 %v784_v14, %v761_v13 }
 0x11a   :  { %v793_v17 = vmax.f32 %v789_v15, 0.0 }
 0x11c   :  { %v998_v18 = vpack.c.bf16 %v793_v17, %v792_v16 }
 0x11e   :  { %1000 = vst [vmem:[%s1438_s3 + $0x8] sm:$0xff] %v998_v18  }

// kernel: _lambda_.5
= control target key start
LH: loop header
LB: loop body
LE: loop exit
PB: predicated region body
PF: predicated region fallthrough
CT: control target
= control target key end

     0   :  { %v502_v1 = vmov 0.0   ;;  %vm503_vm0 = vmmov 0   ;;  %vm200_vm1 = vcmask 523264   ;;  %s635_s1 = inlined_call_operand.vmem [shape: bf16[320,64], index: 1, kind: input, shape index: {}]   ;;  %s636_s0 = inlined_call_operand.vmem [shape: bf16[8,320], index: 0, kind: input, shape index: {}]   ;;  %s637_s3 = inlined_call_operand.vmem [shape: bf16[64,128], index: 3, kind: input, shape index: {}]   ;;  %s638_s2 = inlined_call_operand.vmem [shape: f32[1,64], index: 2, kind: input, shape index: {}]   ;;  %s639_s4 = inlined_call_operand.vmem [shape: f32[1,128], index: 4, kind: input, shape index: {}]   ;;  %s640_s5 = inlined_call_operand.vmem [shape: f32[8,128], index: 5, kind: output, shape index: {}]  }
   0x1   :  { %v471_v0 = vld [vmem:[%s635_s1 + $0x78] sm:$0xff]   ;;  %445 = vmatprep.subr.bf16.mxu1 %v502_v1  ;;  %453 = vmatprep.mubr.msk.bf16.mxu1 %vm503_vm0, %v502_v1  ;;  %v473_v3 = vld [vmem:[%s635_s1 + $0x70] sm:$0xff]   ;;  %v475_v5 = vld [vmem:[%s635_s1 + $0x68] sm:$0xff]  }
   0x2   :  { %v472_v2 = vld [vmem:[%s635_s1 + $0x38] sm:$0xff]   ;;  %413 = vmatprep.subr.bf16.mxu0 %v471_v0  ;;  %v474_v4 = vld [vmem:[%s635_s1 + $0x30] sm:$0xff]   ;;  %v476_v6 = vld [vmem:[%s635_s1 + $0x28] sm:$0xff]  }
   0x3   :  { %414 = vmatpush3.bf16.msra.mxu0 %v472_v2  ;;  %v477_v7 = vld [vmem:[%s635_s1 + $0x60] sm:$0xff]   ;;  %v481_v8 = vld [vmem:[%s635_s1 + $0x98] sm:$0xff]   ;;  %v484_v11 = vld [vmem:[%s635_s1 + $0x90] sm:$0xff]  }
   0x4   :  { %415 = vmatprep.subr.bf16.mxu0 %v473_v3  ;;  %v478_v9 = vld [vmem:[%s635_s1 + $0x20] sm:$0xff]   ;;  %v479_v10 = vld [vmem:[%s635_s1 + $0x58] sm:$0xff]   ;;  %446 = vmatpush3.bf16.msra.mxu1 %v481_v8  ;;  %v482_v13 = vld [vmem:[%s635_s1 + $0x50] sm:$0xff]  }
   0x5   :  { %447 = vmatprep.subr.bf16.mxu1 %v502_v1  ;;  %v480_v12 = vld [vmem:[%s635_s1 + $0x18] sm:$0xff]   ;;  %v487_v14 = vld [vmem:[%s635_s1 + $0x88] sm:$0xff]   ;;  %v483_v15 = vld [vmem:[%s635_s1 + $0x10] sm:$0xff]  }
   0x6   :  { %v485_v16 = vld [vmem:[%s635_s1 + $0x48] sm:$0xff]   ;;  %v490_v17 = vld [vmem:[%s635_s1 + $0x80] sm:$0xff]   ;;  %v494_v23 = vld [vmem:[%s637_s3 + $0x18] sm:$0xff]  }
   0x7   :  { %416 = vmatpush3.bf16.msra.mxu0 %v474_v4  ;;  %v21_v18 = vld [vmem:[%s636_s0] sm:$0xff]  ;;  %v486_v19 = vld [vmem:[%s635_s1 + $0x8] sm:$0xff]   ;;  %v495_v26 = vld [vmem:[%s637_s3 + $0x10] sm:$0xff]  }
   0x8   :  { %417 = vmatprep.subr.bf16.mxu0 %v475_v5  ;;  %448 = vmatpush3.bf16.msra.mxu1 %v484_v11  ;;  %v384_v20 = vcombine.high %v21_v18, %v21_v18  ;;  %v493_v21 = vld [vmem:[%s636_s0 + $0x8] ss:$0 sps:$4 sm:$0xff]   ;;  %v488_v22 = vld [vmem:[%s635_s1 + $0x40] sm:$0xff]   ;;  %v383_v25 = vcombine.low %v21_v18, %v21_v18 }
   0x9   :  { %449 = vmatprep.subr.bf16.mxu1 %v502_v1  ;;  %v489_v24 = vld [vmem:[%s635_s1] sm:$0xff]   ;;  %v496_v27 = vld [vmem:[%s637_s3 + $0x8] sm:$0xff]  }
   0xa   :  { %236 = vmatprep.mubr.bf16.mxu0 %v384_v20  ;;  %v497_v28 = vld [vmem:[%s637_s3] sm:$0xff]  }
   0xb   :  { %418 = vmatpush3.bf16.msra.mxu0 %v476_v6  ;;  %v382_v34 = vld [vmem:[%s638_s2] ss:$0 sm:$0xff] }
   0xc   :  { %419 = vmatprep.subr.bf16.mxu0 %v477_v7  ;;  %450 = vmatpush3.bf16.msra.mxu1 %v487_v14  ;;  %v407_v43 = vld [vmem:[%s639_s4] ss:$0 sm:$0xff] }
   0xd   :  { %451 = vmatprep.subr.bf16.mxu1 %v502_v1 }
   0xf   :  { %420 = vmatpush3.bf16.msra.mxu0 %v478_v9 }
  0x10   :  { %421 = vmatprep.subr.bf16.mxu0 %v479_v10  ;;  %452 = vmatpush3.bf16.msra.mxu1 %v490_v17 }
  0x11   :  { %457 = vmatprep.subr.bf16.mxu1 %v502_v1 }
  0x13   :  { %422 = vmatpush3.bf16.msra.mxu0 %v480_v12  ;;  %454 = vmatmul.mubr.msk.bf16.vlgmr.msra.gmra.mxu1 %vm200_vm1, %v493_v21 }
  0x14   :  { %423 = vmatprep.subr.bf16.mxu0 %v482_v13  ;;  %458 = vmatpush3.bf16.msra.mxu1 %v494_v23 }
  0x15   :  { %459 = vmatprep.subr.bf16.mxu1 %v502_v1  ;;  %465 = vmatprep.mubr.msk.bf16.mxu1 %vm503_vm0, %v502_v1 }
  0x17   :  { %424 = vmatpush3.bf16.msra.mxu0 %v483_v15 }
  0x18   :  { %425 = vmatprep.subr.bf16.mxu0 %v485_v16  ;;  %460 = vmatpush3.bf16.msra.mxu1 %v495_v26 }
  0x19   :  { %461 = vmatprep.subr.bf16.mxu1 %v502_v1 }
  0x1b   :  { %426 = vmatpush3.bf16.msra.mxu0 %v486_v19 }
  0x1c   :  { %427 = vmatprep.subr.bf16.mxu0 %v488_v22  ;;  %462 = vmatpush3.bf16.msra.mxu1 %v496_v27 }
  0x1d   :  { %463 = vmatprep.subr.bf16.mxu1 %v502_v1 }
  0x1f   :  { %428 = vmatpush3.bf16.msra.mxu0 %v489_v24 }
  0x20   :  { %464 = vmatpush3.bf16.msra.mxu1 %v497_v28 }
  0x22   :  { %237 = vmatmul.mubr.bf16.vlgmr.msra.gmra.mxu0 %v383_v25 }
  0xd3   :  { %v278_v29 = vpop.f32.mrf.mxu1 }
  0xd5   :  { %v455_v30 = vpop.f32.mrf.mxu1 }
  0xd7   :  { %v281_v31 = vpop.f32.mrf.mxu1 }
  0xd9   :  { %v456_v32 = vpop.f32.mrf.mxu1 }
  0xe2   :  { %v429_v33 = vpop.f32.mrf.mxu0 }
  0xe4   :  { %v430_v35 = vpop.f32.mrf.mxu0 }
  0xe5   :  { %v431_v36 = vadd.f32 %v430_v35, %v429_v33 }
  0xe6   :  { %v432_v37 = vpop.f32.mrf.mxu0 }
  0xe7   :  { %v239_v38 = vadd.f32 %v431_v36, %v382_v34 }
  0xe8   :  { %v433_v39 = vpop.f32.mrf.mxu0 }
  0xe9   :  { %v279_v40 = vadd.f32 %v278_v29, %v239_v38 }
  0xeb   :  { %v284_v41 = vmax.f32 %v279_v40, 0.0 }
  0xed   :  { %v285_v42 = vpack.c.bf16 %v284_v41, %v284_v41 }
  0xef   :  { %466 = vmatmul.mubr.msk.bf16.vlgmr.msra.gmra.mxu1 %vm200_vm1, %v285_v42 }
 0x1af   :  { %v362_v44 = vpop.f32.mrf.mxu1 }
 0x1b0   :  { %v363_v45 = vadd.f32 %v407_v43, %v362_v44 }
 0x1b1   :  { %v467_v46 = vpop.f32.mrf.mxu1 }
 0x1b2   :  { %368 = vmax.xlane.f32.xlu0 %v363_v45 }
 0x1b3   :  { %v365_v47 = vpop.f32.mrf.mxu1 }
 0x1b5   :  { %v468_v48 = vpop.f32.mrf.mxu1 }
 0x23b   :  { %v369_v49 = vpop.xlane.xlu0 %368 }
 0x23c   :  { %v370_v50 = vsub.f32 %v363_v45, %v369_v49 }
 0x23e   :  { %v371_v51 = vmul.f32 1.442695, %v370_v50 }
 0x240   :  { %498 = vpow2.f32 %v371_v51 }
 0x24d   :  { %v499_v52 = vpop.eup %498 }
 0x24e   :  { %373 = vadd.xlane.f32.xlu0 %v499_v52 }
 0x2d7   :  { %v374_v53 = vpop.xlane.xlu0 %373 }
 0x2d8   :  { %500 = vrcp.f32 %v374_v53 }
 0x2e5   :  { %v501_v54 = vpop.eup %500 }
 0x2e6   :  { %v376_v55 = vmul.f32 %v501_v54, %v499_v52 }
 0x2e8   :  { %377 = vst [vmem:[%s640_s5] sm:$0xff] %v376_v55 }

</bundles_post_ra>
